<compile_context>
chip_gen: v5e
topology: v5e:2x2
jax: 0.10.0
libtpu: 0.0.40
codegen_flags: <defaults>
</compile_context>

<pallas_src>
import functools

import jax
import jax.numpy as jnp
from jax import lax
from jax.experimental import pallas as pl
from jax.experimental.pallas import tpu as pltpu

NEG_BIG = -1e30  # finite "minus infinity": fully-masked rows never produce NaN


def _round_up(x, m):
    return ((x + m - 1) // m) * m


def _pick_tile(total, desired):
    desired = max(128, _round_up(desired, 128))
    if total <= desired:
        return max(128, _round_up(total, 128))
    return desired


def _vmem_limit_bytes():
    cap = 64 * 1024 * 1024  # conservative fallback (v7x per-TC VMEM)
    try:
        info = pltpu.get_tpu_info()
        cap = int(getattr(info, "vmem_capacity_bytes", cap) or cap)
    except Exception:
        pass
    # ~75% of physical: ~96-100 MiB on v5e/v6e (128 MiB), ~48 MiB on v7x (64 MiB)
    return int(min(100 * 1024 * 1024, (cap * 3) // 4))


# ----------------------------------------------------------------------------- LSTM
def lstm_kernel(gx_ref, h0_ref, c0_ref, whh_ref, out_ref, h_sc, c_sc):
    """Recurrent part only (gx already holds x @ W_ih + b). TT steps per grid point."""
    H = h0_ref.shape[1]
    TT = gx_ref.shape[0]

    @pl.when(pl.program_id(0) == 0)
    def _():
        h_sc[...] = h0_ref[...]
        c_sc[...] = c0_ref[...]

    def step(t, carry):
        h, c = carry
        gates = gx_ref[t] + jnp.dot(h, whh_ref[...],
                                    preferred_element_type=jnp.float32)   # [B, 4H]
        i = jax.nn.sigmoid(gates[:, 0:H])
        f = jax.nn.sigmoid(gates[:, H:2 * H])
        g = jnp.tanh(gates[:, 2 * H:3 * H])
        o = jax.nn.sigmoid(gates[:, 3 * H:4 * H])
        c_new = f * c + i * g
        h_new = o * jnp.tanh(c_new)
        out_ref[t] = h_new
        return (h_new, c_new)

    h_fin, c_fin = lax.fori_loop(0, TT, step, (h_sc[...], c_sc[...]), unroll=True)
    h_sc[...] = h_fin
    c_sc[...] = c_fin


def run_lstm(gates_x, h0, c0, w_hh, *, tt, vmem_limit):
    Tp, B, H4 = gates_x.shape
    H = h0.shape[1]
    return pl.pallas_call(
        lstm_kernel,
        out_shape=jax.ShapeDtypeStruct((Tp, B, H), jnp.float32),
        grid=(Tp // tt,),
        in_specs=[
            pl.BlockSpec((tt, B, H4), lambda c: (c, 0, 0)),
            pl.BlockSpec((B, H), lambda c: (0, 0)),
            pl.BlockSpec((B, H), lambda c: (0, 0)),
            pl.BlockSpec((H, H4), lambda c: (0, 0)),
        ],
        out_specs=pl.BlockSpec((tt, B, H), lambda c: (c, 0, 0)),
        scratch_shapes=[pltpu.VMEM((B, H), jnp.float32),
                        pltpu.VMEM((B, H), jnp.float32)],
        compiler_params=pltpu.CompilerParams(
            dimension_semantics=("arbitrary",),
            vmem_limit_bytes=vmem_limit),
    )(gates_x, h0, c0, w_hh)


# -------------------------------------------------- attention over encoder chunks
def attn_kernel(decp_ref, tgt_ref, encp_ref, encs_ref, mask_ref, art_ref,
                vw_ref, vb_ref,
                ctx_ref, hit_ref,
                m_sc, l_sc, hit_sc, ctx_sc):
    """Per decode-step block (TT steps), online softmax over encoder-length blocks.

    Outputs (written on the last L block):
      ctx_ref : attention context (bf16)                [B, TT, 2H]
      hit_ref : attention mass where article_inds==tgt  [B, TT, 1]
                (the copy part of scatter_add+gather, before p_copy scaling).
    """
    li = pl.program_id(1)
    nl = pl.num_programs(1)

    @pl.when(li == 0)
    def _():
        m_sc[...] = jnp.full(m_sc.shape, NEG_BIG, jnp.float32)
        l_sc[...] = jnp.zeros(l_sc.shape, jnp.float32)
        hit_sc[...] = jnp.zeros(hit_sc.shape, jnp.float32)
        ctx_sc[...] = jnp.zeros(ctx_sc.shape, jnp.float32)

    decp = decp_ref[...]                                      # [B, TT, E2] bf16
    tgt = tgt_ref[...]                                        # [B, TT, 1]  int32
    encp = encp_ref[...]                                      # [B, tl, E2] bf16
    encs = encs_ref[...]                                      # [B, tl, E2] bf16
    mask = mask_ref[...]                                      # [B, tl] f32 (1 = pad)
    art = art_ref[...]                                        # [B, tl] int32

    # bf16 elementwise, f32 accumulation for the score reduction
    e = jnp.tanh(encp[:, None, :, :] + decp[:, :, None, :])   # [B, TT, tl, E2] bf16
    scores = jnp.sum((e * vw_ref[...]).astype(jnp.float32), axis=-1) + vb_ref[...]
    scores = jnp.where(mask[:, None, :] > 0.0, NEG_BIG, scores)   # [B, TT, tl] f32

    m_prev = m_sc[...]
    m_new = jnp.maximum(m_prev, jnp.max(scores, axis=2, keepdims=True))
    alpha = jnp.exp(m_prev - m_new)
    p = jnp.exp(scores - m_new)                               # [B, TT, tl] f32

    l_sc[...] = alpha * l_sc[...] + jnp.sum(p, axis=2, keepdims=True)
    hit = (art[:, None, :] == tgt).astype(jnp.float32)        # [B, TT, tl]
    hit_sc[...] = alpha * hit_sc[...] + jnp.sum(p * hit, axis=2, keepdims=True)
    # context contraction on the MXU (batched over B)
    ctx_sc[...] = alpha * ctx_sc[...] + jnp.einsum(
        "btl,bld->btd", p.astype(encs.dtype), encs,
        preferred_element_type=jnp.float32)
    m_sc[...] = m_new

    @pl.when(li == nl - 1)
    def _():
        inv_l = 1.0 / l_sc[...]                               # exact: feeds the loss
        ctx_ref[...] = (ctx_sc[...] * inv_l).astype(ctx_ref.dtype)
        hit_ref[...] = hit_sc[...] * inv_l


def run_attention(dec_proj, targets, enc_proj, enc_states, enc_mask,
                  article_inds, v_w, v_b, *, tt, tl, vmem_limit):
    B, Tp, E2 = dec_proj.shape
    Lp = enc_proj.shape[1]
    TC, NL = Tp // tt, Lp // tl
    return pl.pallas_call(
        attn_kernel,
        out_shape=(jax.ShapeDtypeStruct((B, Tp, E2), jnp.bfloat16),
                   jax.ShapeDtypeStruct((B, Tp, 1), jnp.float32)),
        grid=(TC, NL),
        in_specs=[
            pl.BlockSpec((B, tt, E2), lambda c, l: (0, c, 0)),   # dec_proj (bf16)
            pl.BlockSpec((B, tt, 1), lambda c, l: (0, c, 0)),    # target ids
            pl.BlockSpec((B, tl, E2), lambda c, l: (0, l, 0)),   # enc_proj (bf16)
            pl.BlockSpec((B, tl, E2), lambda c, l: (0, l, 0)),   # enc_states (bf16)
            pl.BlockSpec((B, tl), lambda c, l: (0, l)),          # enc_mask
            pl.BlockSpec((B, tl), lambda c, l: (0, l)),          # article_inds
            pl.BlockSpec((1, E2), lambda c, l: (0, 0)),          # v weight (bf16)
            pl.BlockSpec((1, 1), lambda c, l: (0, 0)),           # v bias
        ],
        out_specs=(pl.BlockSpec((B, tt, E2), lambda c, l: (0, c, 0)),
                   pl.BlockSpec((B, tt, 1), lambda c, l: (0, c, 0))),
        scratch_shapes=[pltpu.VMEM((B, tt, 1), jnp.float32),
                        pltpu.VMEM((B, tt, 1), jnp.float32),
                        pltpu.VMEM((B, tt, 1), jnp.float32),
                        pltpu.VMEM((B, tt, E2), jnp.float32)],
        compiler_params=pltpu.CompilerParams(
            dimension_semantics=("parallel", "arbitrary"),
            vmem_limit_bytes=vmem_limit),
    )(dec_proj, targets, enc_proj, enc_states, enc_mask, article_inds, v_w, v_b)


# ------------------------------------------- streamed vocab projection + NLL loss
def vocab_loss_kernel(hc_ref, side_ref, col_ref, vw_ref, vb_ref,
                      loss_ref,
                      m_sc, l_sc, num_sc, *, vocab_size, unk_id):
    """Per decode-step block, stream V_w over vocab chunks with an online softmax.
    Only the denominator and the probability mass at the target index are kept --
    exactly combined_vocab.scatter_add(...).gather(target)."""
    kv = pl.program_id(1)
    nv = pl.num_programs(1)

    @pl.when(kv == 0)
    def _():
        m_sc[...] = jnp.full(m_sc.shape, NEG_BIG, jnp.float32)
        l_sc[...] = jnp.zeros(l_sc.shape, jnp.float32)
        num_sc[...] = jnp.zeros(num_sc.shape, jnp.float32)

    B, TT, H3 = hc_ref.shape
    hc = hc_ref[...].reshape(B * TT, H3)                      # bf16 hidden||context
    logits = jnp.dot(hc, vw_ref[...],
                     preferred_element_type=jnp.float32).reshape(B, TT, -1)
    logits = logits + vb_ref[...]                             # [B, TT, tv]
    col = col_ref[...]                                        # [1, tv] int32
    logits = jnp.where(col < vocab_size, logits, NEG_BIG)     # mask padded vocab cols

    side = side_ref[...]                                      # [B, TT, 4] f32
    tgt = side[:, :, 0:1].astype(jnp.int32)                   # [B, TT, 1]

    m_prev = m_sc[...]
    m_new = jnp.maximum(m_prev, jnp.max(logits, axis=2, keepdims=True))
    alpha = jnp.exp(m_prev - m_new)
    p = jnp.exp(logits - m_new)                               # [B, TT, tv]
    l_sc[...] = alpha * l_sc[...] + jnp.sum(p, axis=2, keepdims=True)
    num_sc[...] = alpha * num_sc[...] + jnp.sum(
        jnp.where(col == tgt, p, 0.0), axis=2, keepdims=True)
    m_sc[...] = m_new

    @pl.when(kv == nv - 1)
    def _():
        pgen = side[:, :, 1:2]
        copy = side[:, :, 2:3]
        dmask = side[:, :, 3:4]
        p_tgt = num_sc[...] / l_sc[...]                       # exact: feeds -log
        out = pgen * p_tgt + copy
        out = jnp.where(tgt == unk_id, 1.0, out)
        out = jnp.where(dmask > 0.0, out, 1.0)                # avoid log(0)*0 NaN
        step_loss = -jnp.log(out) * dmask                     # [B, TT, 1]
        loss_ref[0] = jnp.sum(step_loss, axis=1)              # [B, 1] per step-block


def run_vocab_loss(hc, side, col_ids, vw, vb, *, tt, tv, vocab_size, unk_id,
                   vmem_limit):
    B, Tp, H3 = hc.shape
    Vp = col_ids.shape[1]
    TC, NV = Tp // tt, Vp // tv
    kernel = functools.partial(vocab_loss_kernel, vocab_size=vocab_size,
                               unk_id=unk_id)
    return pl.pallas_call(
        kernel,
        out_shape=jax.ShapeDtypeStruct((TC, B, 1), jnp.float32),
        grid=(TC, NV),
        in_specs=[
            pl.BlockSpec((B, tt, H3), lambda c, k: (0, c, 0)),   # hidden||context (bf16)
            pl.BlockSpec((B, tt, 4), lambda c, k: (0, c, 0)),    # packed side inputs
            pl.BlockSpec((1, tv), lambda c, k: (0, k)),          # column ids
            pl.BlockSpec((H3, tv), lambda c, k: (0, k)),         # V_w (bf16)
            pl.BlockSpec((1, tv), lambda c, k: (0, k)),          # V_b
        ],
        out_specs=pl.BlockSpec((1, B, 1), lambda c, k: (c, 0, 0)),
        scratch_shapes=[pltpu.VMEM((B, tt, 1), jnp.float32),
                        pltpu.VMEM((B, tt, 1), jnp.float32),
                        pltpu.VMEM((B, tt, 1), jnp.float32)],
        compiler_params=pltpu.CompilerParams(
            dimension_semantics=("parallel", "arbitrary"),
            vmem_limit_bytes=vmem_limit),
    )(hc, side, col_ids, vw, vb)


# ------------------------------------------------------------------------- wrapper
def pointer_attention_forward(params, enc_states, enc_final_h, enc_final_c,
                              enc_mask, article_inds, _input, targets,
                              dec_lens, dec_mask, *, vocab_size, nprons, unk_id,
                              tt=16, tl=512, tv=512):
    f32, bf16 = jnp.float32, jnp.bfloat16
    B0, L0, E2 = enc_states.shape
    T0 = _input.shape[1]
    H = enc_final_h.shape[1]
    I = params["embed"].shape[1]
    V = vocab_size
    vmem_limit = _vmem_limit_bytes()

    # --- tile / padding sizes --------------------------------------------------
    tt = max(16, _round_up(tt, 16))          # bf16 sublane-friendly step block
    Bp = _round_up(max(B0, 8), 8)            # padded batch rows are fully masked
    Tp = _round_up(max(T0, tt), tt)          # padded steps have dec_mask == 0
    tl = _pick_tile(L0, tl)
    tv = _pick_tile(V, tv)
    Lp = _round_up(L0, tl)
    Vp = _round_up(V, tv)

    pb, pt, plen = Bp - B0, Tp - T0, Lp - L0
    enc_states = jnp.pad(enc_states, ((0, pb), (0, plen), (0, 0)))
    enc_final_h = jnp.pad(enc_final_h, ((0, pb), (0, 0)))
    enc_final_c = jnp.pad(enc_final_c, ((0, pb), (0, 0)))
    enc_mask = jnp.pad(enc_mask.astype(f32), ((0, pb), (0, plen)),
                       constant_values=1.0)
    article_inds = jnp.pad(article_inds, ((0, pb), (0, plen)))
    _input = jnp.pad(_input, ((0, pb), (0, pt)))
    targets = jnp.pad(targets, ((0, pb), (0, pt)))
    dec_lens = jnp.pad(dec_lens, ((0, pb),), constant_values=1)
    dec_mask = jnp.pad(dec_mask, ((0, pb), (0, pt)))

    # --- glue (plain XLA): embedding + hoisted big matmuls ---------------------
    emb = params["embed"][_input].astype(f32)                          # [Bp,Tp,I]
    gates = (emb.reshape(Bp * Tp, I) @ params["lstm_wih"]
             + params["lstm_b"]).reshape(Bp, Tp, 4 * H)
    gates_t = jnp.transpose(gates, (1, 0, 2))                          # [Tp,Bp,4H]

    hidden_t = run_lstm(gates_t, enc_final_h.astype(f32),
                        enc_final_c.astype(f32), params["lstm_whh"],
                        tt=tt, vmem_limit=vmem_limit)                  # [Tp,Bp,H]
    hidden = jnp.transpose(hidden_t, (1, 0, 2))                        # [Bp,Tp,H]

    dec_proj = ((hidden.reshape(Bp * Tp, H) @ params["Ws_w"] + params["Ws_b"])
                .reshape(Bp, Tp, E2)).astype(bf16)                     # [Bp,Tp,2H]

    enc_proj = (enc_states @ params["Wh_w"] + params["Wh_b"]).astype(bf16)
    enc_states_b = enc_states.astype(bf16)

    targets_b = targets[:, :, None].astype(jnp.int32)                  # [Bp,Tp,1]
    dmask_b = dec_mask[:, :, None].astype(f32)                         # [Bp,Tp,1]

    # --- kernel A: attention (T-blocked online softmax over encoder chunks) ----
    context_b, hit_b = run_attention(
        dec_proj, targets_b, enc_proj, enc_states_b,
        enc_mask, article_inds.astype(jnp.int32),
        params["v_w"].astype(bf16), params["v_b"],
        tt=tt, tl=tl, vmem_limit=vmem_limit)
    context_f = context_b.astype(f32)

    # --- glue: tiny N=3 switch head --------------------------------------------
    encc = enc_final_h @ params["w_c_w"] + params["w_c_b"]             # [Bp,3]
    sw_logits = (hidden @ params["w_s_w"] + emb @ params["w_x_w"]
                 + context_f @ params["w_h_w"] + params["sw_b"]
                 + encc[:, None, :])                                   # [Bp,Tp,3]
    p_switch = jax.nn.softmax(sw_logits, axis=-1)
    p_gen_tgt = jnp.where(targets_b < V - nprons,
                          p_switch[..., 0:1], p_switch[..., 1:2])      # [Bp,Tp,1]
    copy_mass = p_switch[..., 2:3] * hit_b                             # [Bp,Tp,1]

    # --- kernel B: streamed vocab projection + online softmax + NLL ------------
    hc = jnp.concatenate([hidden.astype(bf16), context_b], axis=-1)    # [Bp,Tp,3H]
    side = jnp.concatenate([targets_b.astype(f32), p_gen_tgt,
                            copy_mass, dmask_b], axis=-1)              # [Bp,Tp,4]
    col_ids = jnp.arange(Vp, dtype=jnp.int32)[None, :]                 # [1,Vp]
    vw = jnp.pad(params["V_w"], ((0, 0), (0, Vp - V))).astype(bf16)    # [3H,Vp]
    vb = jnp.pad(params["V_b"], ((0, 0), (0, Vp - V)))                 # [1,Vp]

    chunk_loss = run_vocab_loss(hc, side, col_ids, vw, vb,
                                tt=tt, tv=tv, vocab_size=V, unk_id=unk_id,
                                vmem_limit=vmem_limit)                 # [TC,Bp,1]

    total = chunk_loss.sum(axis=0)[:, 0] / dec_lens.astype(f32)        # [Bp]
    return total[:B0]
    # TODO(synk): beam-search / greedy decode paths (Hypothesis bookkeeping,
    # host-side dynamic control flow) are not implemented as kernels.


# ------------------------------------------------------------------- pure-JAX reference
def reference_forward(params, enc_states, h0, c0, enc_mask, article_inds,
                      _input, targets, dec_lens, dec_mask,
                      vocab_size, nprons, unk_id, max_oov):
    B, L, _ = enc_states.shape
    T = _input.shape[1]
    H = h0.shape[1]
    emb = params["embed"][_input]
    enc_proj = enc_states @ params["Wh_w"] + params["Wh_b"]

    def lstm_step(carry, x_t):
        h, c = carry
        gates = x_t @ params["lstm_wih"] + h @ params["lstm_whh"] + params["lstm_b"][0]
        i = jax.nn.sigmoid(gates[:, :H]); f = jax.nn.sigmoid(gates[:, H:2 * H])
        g = jnp.tanh(gates[:, 2 * H:3 * H]); o = jax.nn.sigmoid(gates[:, 3 * H:])
        c = f * c + i * g
        h = o * jnp.tanh(c)
        return (h, c), h

    xs = jnp.transpose(emb, (1, 0, 2))
    _, hs = lax.scan(lstm_step, (h0, c0), xs)
    encc = h0 @ params["w_c_w"] + params["w_c_b"]
    losses = []
    for t in range(T):
        _h = hs[t]
        dec_proj = _h @ params["Ws_w"] + params["Ws_b"]
        e = jnp.tanh(enc_proj + dec_proj[:, None, :])
        scores = jnp.einsum("bld,d->bl", e, params["v_w"][0]) + params["v_b"][0, 0]
        scores = jnp.where(enc_mask > 0, -jnp.inf, scores)
        attn = jax.nn.softmax(scores, axis=1)
        context = jnp.einsum("bl,bld->bd", attn, enc_states)
        logits = jnp.concatenate([_h, context], axis=1) @ params["V_w"] + params["V_b"][0]
        p_vocab = jax.nn.softmax(logits, axis=1)
        sw = (context @ params["w_h_w"] + _h @ params["w_s_w"]
              + emb[:, t, :] @ params["w_x_w"] + params["sw_b"][0] + encc)
        p_switch = jax.nn.softmax(sw, axis=1)
        p_gen = jnp.concatenate(
            [jnp.broadcast_to(p_switch[:, 0:1], (B, vocab_size - nprons)),
             jnp.broadcast_to(p_switch[:, 1:2], (B, nprons))], axis=1)
        w_pvocab = p_gen * p_vocab
        w_attn = p_switch[:, 2:3] * attn
        combined = jnp.concatenate([w_pvocab, jnp.zeros((B, max_oov), jnp.float32)], axis=1)
        combined = combined.at[jnp.arange(B)[:, None], article_inds].add(w_attn)
        out = combined[jnp.arange(B), targets[:, t]]
        out = jnp.where(targets[:, t] == unk_id, 1.0, out)
        losses.append(-jnp.log(out) * dec_mask[:, t])
    return jnp.stack(losses, 1).sum(1) / dec_lens.astype(jnp.float32)


# ----------------------------------------------------------------------------- main
if __name__ == "__main__":
    B, L, T = 2, 256, 8
    H, I = 16, 16                      # hidden_size, input_size
    V, NPRONS = 256, 4                 # vocab_size, nprons
    MAX_OOV, UNK = 8, 1

    key = jax.random.PRNGKey(0)
    ks = jax.random.split(key, 24)
    nrm = lambda k, s, sc=0.1: (jax.random.normal(k, s) * sc).astype(jnp.float32)

    params = {
        "embed":    nrm(ks[0], (V, I)),
        "lstm_wih": nrm(ks[1], (I, 4 * H)),
        "lstm_whh": nrm(ks[2], (H, 4 * H)),
        "lstm_b":   nrm(ks[3], (1, 4 * H)),
        "Wh_w":     nrm(ks[4], (2 * H, 2 * H)),
        "Wh_b":     nrm(ks[5], (2 * H,)),
        "Ws_w":     nrm(ks[6], (H, 2 * H)),
        "Ws_b":     nrm(ks[7], (1, 2 * H)),
        "v_w":      nrm(ks[8], (1, 2 * H)),
        "v_b":      nrm(ks[9], (1, 1)),
        "V_w":      nrm(ks[10], (3 * H, V)),
        "V_b":      nrm(ks[11], (1, V)),
        "w_h_w":    nrm(ks[12], (2 * H, 3)),
        "w_s_w":    nrm(ks[13], (H, 3)),
        "w_x_w":    nrm(ks[14], (I, 3)),
        "w_c_w":    nrm(ks[15], (H, 3)),
        "w_c_b":    nrm(ks[16], (1, 3)),
        "sw_b":     nrm(ks[17], (1, 3)),   # b_h + b_s + b_x combined
    }

    enc_states = nrm(ks[18], (B, L, 2 * H), 1.0)
    enc_final_h = nrm(ks[19], (B, H), 1.0)
    enc_final_c = nrm(ks[20], (B, H), 1.0)

    enc_lens = jnp.array([L, 192], jnp.int32)
    enc_mask = (jnp.arange(L)[None, :] >= enc_lens[:, None]).astype(jnp.float32)  # 1 = pad

    article_inds = jax.random.randint(ks[21], (B, L), 0, V + MAX_OOV).astype(jnp.int32)
    article_inds = article_inds.at[1, 0].set(V + 1)   # an in-article OOV id

    _input = jax.random.randint(ks[22], (B, T), 0, V).astype(jnp.int32)
    targets = jax.random.randint(ks[23], (B, T), 0, V).astype(jnp.int32)
    targets = targets.at[0, 2].set(UNK)               # exercise unk masking
    targets = targets.at[1, 3].set(V + 1)             # exercise copy-only OOV target

    dec_lens = jnp.array([T, 5], jnp.int32)
    dec_mask = (jnp.arange(T)[None, :] < dec_lens[:, None]).astype(jnp.float32)

    out = pointer_attention_forward(
        params, enc_states, enc_final_h, enc_final_c, enc_mask, article_inds,
        _input, targets, dec_lens, dec_mask,
        vocab_size=V, nprons=NPRONS, unk_id=UNK, tt=16, tl=512, tv=512)
    out = jax.block_until_ready(out)

    ref = reference_forward(
        params, enc_states, enc_final_h, enc_final_c, enc_mask, article_inds,
        _input, targets, dec_lens, dec_mask, V, NPRONS, UNK, MAX_OOV)
    ref = jax.block_until_ready(ref)

    if not bool(jnp.allclose(out, ref, rtol=1e-2, atol=1e-2)):
        raise AssertionError(f"mismatch: kernel={out} ref={ref}")
    print("KERNEL_OK")
</pallas_src>

<mosaic_0001>
module attributes {stable_mosaic.version = 11 : i64} {
  func.func @lstm_kernel(%arg0: i32, %arg1: memref<16x8x64xf32, #tpu.memory_space<vmem>>, %arg2: memref<8x16xf32, #tpu.memory_space<vmem>>, %arg3: memref<8x16xf32, #tpu.memory_space<vmem>>, %arg4: memref<16x64xf32, #tpu.memory_space<vmem>>, %arg5: memref<16x8x16xf32, #tpu.memory_space<vmem>>, %arg6: memref<8x16xf32, #tpu.memory_space<vmem>>, %arg7: memref<8x16xf32, #tpu.memory_space<vmem>>) attributes {dimension_semantics = [#tpu.dimension_semantics<arbitrary>], iteration_bounds = array<i64: 1>, scalar_prefetch = 0 : i64, scratch_operands = 2 : i64, tpu.core_type = #tpu.core_type<tc>, window_params = [{transform_indices = @transform_0, window_bounds = array<i64: 16, 8, 64>}, {pipeline_mode = #tpu.pipeline_mode<synchronous>, transform_indices = @transform_1, window_bounds = array<i64: 8, 16>}, {pipeline_mode = #tpu.pipeline_mode<synchronous>, transform_indices = @transform_2, window_bounds = array<i64: 8, 16>}, {pipeline_mode = #tpu.pipeline_mode<synchronous>, transform_indices = @transform_3, window_bounds = array<i64: 16, 64>}, {transform_indices = @transform_4, window_bounds = array<i64: 16, 8, 16>}]} {
    %c0_i32 = arith.constant 0 : i32
    %0 = arith.cmpi eq, %arg0, %c0_i32 : i32
    %1 = arith.extui %0 : i1 to i32
    %c0_i32_0 = arith.constant 0 : i32
    %2 = arith.cmpi ne, %1, %c0_i32_0 : i32
    scf.if %2 {
      %c0_168 = arith.constant 0 : index
      %c0_169 = arith.constant 0 : index
      %567 = vector.load %arg2[%c0_168, %c0_169] : memref<8x16xf32, #tpu.memory_space<vmem>>, vector<8x16xf32>
      %c0_170 = arith.constant 0 : index
      %c0_171 = arith.constant 0 : index
      %568 = vector.load %arg6[%c0_170, %c0_171] : memref<8x16xf32, #tpu.memory_space<vmem>>, vector<8x16xf32>
      tpu.vector_store %arg6[%c0_170, %c0_171], %567 {strides = array<i32>} : memref<8x16xf32, #tpu.memory_space<vmem>>, vector<8x16xf32>,
      %c0_172 = arith.constant 0 : index
      %c0_173 = arith.constant 0 : index
      %569 = vector.load %arg3[%c0_172, %c0_173] : memref<8x16xf32, #tpu.memory_space<vmem>>, vector<8x16xf32>
      %c0_174 = arith.constant 0 : index
      %c0_175 = arith.constant 0 : index
      %570 = vector.load %arg7[%c0_174, %c0_175] : memref<8x16xf32, #tpu.memory_space<vmem>>, vector<8x16xf32>
      tpu.vector_store %arg7[%c0_174, %c0_175], %569 {strides = array<i32>} : memref<8x16xf32, #tpu.memory_space<vmem>>, vector<8x16xf32>,
    } else {
    }
    %c0 = arith.constant 0 : index
    %c0_1 = arith.constant 0 : index
    %3 = vector.load %arg6[%c0, %c0_1] : memref<8x16xf32, #tpu.memory_space<vmem>>, vector<8x16xf32>
    %c0_2 = arith.constant 0 : index
    %c0_3 = arith.constant 0 : index
    %4 = vector.load %arg7[%c0_2, %c0_3] : memref<8x16xf32, #tpu.memory_space<vmem>>, vector<8x16xf32>
    %c0_i32_4 = arith.constant 0 : i32
    %5 = arith.index_cast %c0_i32_4 : i32 to index
    %c0_5 = arith.constant 0 : index
    %c0_6 = arith.constant 0 : index
    %6 = vector.load %arg1[%5, %c0_5, %c0_6] : memref<16x8x64xf32, #tpu.memory_space<vmem>>, vector<1x8x64xf32>
    %7 = vector.shape_cast %6 : vector<1x8x64xf32> to vector<8x64xf32>
    %c0_7 = arith.constant 0 : index
    %c0_8 = arith.constant 0 : index
    %8 = vector.load %arg4[%c0_7, %c0_8] : memref<16x64xf32, #tpu.memory_space<vmem>>, vector<16x64xf32>
    %cst = arith.constant dense<0.000000e+00> : vector<8x64xf32>
    %9 = tpu.matmul %3, %8, %cst {dimension_numbers = #tpu.dot_dimension_numbers<[1], [0], [0], [1], [0, 0, 1, 1], [], []>} : vector<8x16xf32>, vector<16x64xf32>, vector<8x64xf32> -> vector<8x64xf32>
    %10 = arith.addf %7, %9 : vector<8x64xf32>
    %11 = vector.extract_strided_slice %10 {offsets = [0, 0], sizes = [8, 16], strides = [1, 1]} : vector<8x64xf32> to vector<8x16xf32>
    %12 = arith.negf %11 : vector<8x16xf32>
    %13 = math.exp %12 : vector<8x16xf32>
    %cst_9 = arith.constant 1.000000e+00 : f32
    %14 = vector.broadcast %cst_9 : f32 to vector<8x16xf32>
    %15 = arith.addf %14, %13 : vector<8x16xf32>
    %16 = arith.divf %14, %15 : vector<8x16xf32>
    %17 = vector.extract_strided_slice %10 {offsets = [0, 16], sizes = [8, 16], strides = [1, 1]} : vector<8x64xf32> to vector<8x16xf32>
    %18 = arith.negf %17 : vector<8x16xf32>
    %19 = math.exp %18 : vector<8x16xf32>
    %cst_10 = arith.constant 1.000000e+00 : f32
    %20 = vector.broadcast %cst_10 : f32 to vector<8x16xf32>
    %21 = arith.addf %20, %19 : vector<8x16xf32>
    %22 = arith.divf %20, %21 : vector<8x16xf32>
    %23 = vector.extract_strided_slice %10 {offsets = [0, 32], sizes = [8, 16], strides = [1, 1]} : vector<8x64xf32> to vector<8x16xf32>
    %24 = math.tanh %23 : vector<8x16xf32>
    %25 = vector.extract_strided_slice %10 {offsets = [0, 48], sizes = [8, 16], strides = [1, 1]} : vector<8x64xf32> to vector<8x16xf32>
    %26 = arith.negf %25 : vector<8x16xf32>
    %27 = math.exp %26 : vector<8x16xf32>
    %cst_11 = arith.constant 1.000000e+00 : f32
    %28 = vector.broadcast %cst_11 : f32 to vector<8x16xf32>
    %29 = arith.addf %28, %27 : vector<8x16xf32>
    %30 = arith.divf %28, %29 : vector<8x16xf32>
    %31 = arith.mulf %22, %4 : vector<8x16xf32>
    %32 = arith.mulf %16, %24 : vector<8x16xf32>
    %33 = arith.addf %31, %32 : vector<8x16xf32>
    %34 = math.tanh %33 : vector<8x16xf32>
    %35 = arith.mulf %30, %34 : vector<8x16xf32>
    %36 = arith.index_cast %c0_i32_4 : i32 to index
    %c0_12 = arith.constant 0 : index
    %c0_13 = arith.constant 0 : index
    %37 = vector.load %arg5[%36, %c0_12, %c0_13] : memref<16x8x16xf32, #tpu.memory_space<vmem>>, vector<1x8x16xf32>
    %38 = vector.shape_cast %37 : vector<1x8x16xf32> to vector<8x16xf32>
    %39 = vector.shape_cast %35 : vector<8x16xf32> to vector<1x8x16xf32>
    tpu.vector_store %arg5[%36, %c0_12, %c0_13], %39 {strides = array<i32>} : memref<16x8x16xf32, #tpu.memory_space<vmem>>, vector<1x8x16xf32>,
    %c1_i32 = arith.constant 1 : i32
    %40 = arith.index_cast %c1_i32 : i32 to index
    %c0_14 = arith.constant 0 : index
    %c0_15 = arith.constant 0 : index
    %41 = vector.load %arg1[%40, %c0_14, %c0_15] : memref<16x8x64xf32, #tpu.memory_space<vmem>>, vector<1x8x64xf32>
    %42 = vector.shape_cast %41 : vector<1x8x64xf32> to vector<8x64xf32>
    %c0_16 = arith.constant 0 : index
    %c0_17 = arith.constant 0 : index
    %43 = vector.load %arg4[%c0_16, %c0_17] : memref<16x64xf32, #tpu.memory_space<vmem>>, vector<16x64xf32>
    %cst_18 = arith.constant dense<0.000000e+00> : vector<8x64xf32>
    %44 = tpu.matmul %35, %43, %cst_18 {dimension_numbers = #tpu.dot_dimension_numbers<[1], [0], [0], [1], [0, 0, 1, 1], [], []>} : vector<8x16xf32>, vector<16x64xf32>, vector<8x64xf32> -> vector<8x64xf32>
    %45 = arith.addf %42, %44 : vector<8x64xf32>
    %46 = vector.extract_strided_slice %45 {offsets = [0, 0], sizes = [8, 16], strides = [1, 1]} : vector<8x64xf32> to vector<8x16xf32>
    %47 = arith.negf %46 : vector<8x16xf32>
    %48 = math.exp %47 : vector<8x16xf32>
    %cst_19 = arith.constant 1.000000e+00 : f32
    %49 = vector.broadcast %cst_19 : f32 to vector<8x16xf32>
    %50 = arith.addf %49, %48 : vector<8x16xf32>
    %51 = arith.divf %49, %50 : vector<8x16xf32>
    %52 = vector.extract_strided_slice %45 {offsets = [0, 16], sizes = [8, 16], strides = [1, 1]} : vector<8x64xf32> to vector<8x16xf32>
    %53 = arith.negf %52 : vector<8x16xf32>
    %54 = math.exp %53 : vector<8x16xf32>
    %cst_20 = arith.constant 1.000000e+00 : f32
    %55 = vector.broadcast %cst_20 : f32 to vector<8x16xf32>
    %56 = arith.addf %55, %54 : vector<8x16xf32>
    %57 = arith.divf %55, %56 : vector<8x16xf32>
    %58 = vector.extract_strided_slice %45 {offsets = [0, 32], sizes = [8, 16], strides = [1, 1]} : vector<8x64xf32> to vector<8x16xf32>
    %59 = math.tanh %58 : vector<8x16xf32>
    %60 = vector.extract_strided_slice %45 {offsets = [0, 48], sizes = [8, 16], strides = [1, 1]} : vector<8x64xf32> to vector<8x16xf32>
    %61 = arith.negf %60 : vector<8x16xf32>
    %62 = math.exp %61 : vector<8x16xf32>
    %cst_21 = arith.constant 1.000000e+00 : f32
    %63 = vector.broadcast %cst_21 : f32 to vector<8x16xf32>
    %64 = arith.addf %63, %62 : vector<8x16xf32>
    %65 = arith.divf %63, %64 : vector<8x16xf32>
    %66 = arith.mulf %57, %33 : vector<8x16xf32>
    %67 = arith.mulf %51, %59 : vector<8x16xf32>
    %68 = arith.addf %66, %67 : vector<8x16xf32>
    %69 = math.tanh %68 : vector<8x16xf32>
    %70 = arith.mulf %65, %69 : vector<8x16xf32>
    %71 = arith.index_cast %c1_i32 : i32 to index
    %c0_22 = arith.constant 0 : index
    %c0_23 = arith.constant 0 : index
    %72 = vector.load %arg5[%71, %c0_22, %c0_23] : memref<16x8x16xf32, #tpu.memory_space<vmem>>, vector<1x8x16xf32>
    %73 = vector.shape_cast %72 : vector<1x8x16xf32> to vector<8x16xf32>
    %74 = vector.shape_cast %70 : vector<8x16xf32> to vector<1x8x16xf32>
    tpu.vector_store %arg5[%71, %c0_22, %c0_23], %74 {strides = array<i32>} : memref<16x8x16xf32, #tpu.memory_space<vmem>>, vector<1x8x16xf32>,
    %c2_i32 = arith.constant 2 : i32
    %75 = arith.index_cast %c2_i32 : i32 to index
    %c0_24 = arith.constant 0 : index
    %c0_25 = arith.constant 0 : index
    %76 = vector.load %arg1[%75, %c0_24, %c0_25] : memref<16x8x64xf32, #tpu.memory_space<vmem>>, vector<1x8x64xf32>
    %77 = vector.shape_cast %76 : vector<1x8x64xf32> to vector<8x64xf32>
    %c0_26 = arith.constant 0 : index
    %c0_27 = arith.constant 0 : index
    %78 = vector.load %arg4[%c0_26, %c0_27] : memref<16x64xf32, #tpu.memory_space<vmem>>, vector<16x64xf32>
    %cst_28 = arith.constant dense<0.000000e+00> : vector<8x64xf32>
    %79 = tpu.matmul %70, %78, %cst_28 {dimension_numbers = #tpu.dot_dimension_numbers<[1], [0], [0], [1], [0, 0, 1, 1], [], []>} : vector<8x16xf32>, vector<16x64xf32>, vector<8x64xf32> -> vector<8x64xf32>
    %80 = arith.addf %77, %79 : vector<8x64xf32>
    %81 = vector.extract_strided_slice %80 {offsets = [0, 0], sizes = [8, 16], strides = [1, 1]} : vector<8x64xf32> to vector<8x16xf32>
    %82 = arith.negf %81 : vector<8x16xf32>
    %83 = math.exp %82 : vector<8x16xf32>
    %cst_29 = arith.constant 1.000000e+00 : f32
    %84 = vector.broadcast %cst_29 : f32 to vector<8x16xf32>
    %85 = arith.addf %84, %83 : vector<8x16xf32>
    %86 = arith.divf %84, %85 : vector<8x16xf32>
    %87 = vector.extract_strided_slice %80 {offsets = [0, 16], sizes = [8, 16], strides = [1, 1]} : vector<8x64xf32> to vector<8x16xf32>
    %88 = arith.negf %87 : vector<8x16xf32>
    %89 = math.exp %88 : vector<8x16xf32>
    %cst_30 = arith.constant 1.000000e+00 : f32
    %90 = vector.broadcast %cst_30 : f32 to vector<8x16xf32>
    %91 = arith.addf %90, %89 : vector<8x16xf32>
    %92 = arith.divf %90, %91 : vector<8x16xf32>
    %93 = vector.extract_strided_slice %80 {offsets = [0, 32], sizes = [8, 16], strides = [1, 1]} : vector<8x64xf32> to vector<8x16xf32>
    %94 = math.tanh %93 : vector<8x16xf32>
    %95 = vector.extract_strided_slice %80 {offsets = [0, 48], sizes = [8, 16], strides = [1, 1]} : vector<8x64xf32> to vector<8x16xf32>
    %96 = arith.negf %95 : vector<8x16xf32>
    %97 = math.exp %96 : vector<8x16xf32>
    %cst_31 = arith.constant 1.000000e+00 : f32
    %98 = vector.broadcast %cst_31 : f32 to vector<8x16xf32>
    %99 = arith.addf %98, %97 : vector<8x16xf32>
    %100 = arith.divf %98, %99 : vector<8x16xf32>
    %101 = arith.mulf %92, %68 : vector<8x16xf32>
    %102 = arith.mulf %86, %94 : vector<8x16xf32>
    %103 = arith.addf %101, %102 : vector<8x16xf32>
    %104 = math.tanh %103 : vector<8x16xf32>
    %105 = arith.mulf %100, %104 : vector<8x16xf32>
    %106 = arith.index_cast %c2_i32 : i32 to index
    %c0_32 = arith.constant 0 : index
    %c0_33 = arith.constant 0 : index
    %107 = vector.load %arg5[%106, %c0_32, %c0_33] : memref<16x8x16xf32, #tpu.memory_space<vmem>>, vector<1x8x16xf32>
    %108 = vector.shape_cast %107 : vector<1x8x16xf32> to vector<8x16xf32>
    %109 = vector.shape_cast %105 : vector<8x16xf32> to vector<1x8x16xf32>
    tpu.vector_store %arg5[%106, %c0_32, %c0_33], %109 {strides = array<i32>} : memref<16x8x16xf32, #tpu.memory_space<vmem>>, vector<1x8x16xf32>,
    %c3_i32 = arith.constant 3 : i32
    %110 = arith.index_cast %c3_i32 : i32 to index
    %c0_34 = arith.constant 0 : index
    %c0_35 = arith.constant 0 : index
    %111 = vector.load %arg1[%110, %c0_34, %c0_35] : memref<16x8x64xf32, #tpu.memory_space<vmem>>, vector<1x8x64xf32>
    %112 = vector.shape_cast %111 : vector<1x8x64xf32> to vector<8x64xf32>
    %c0_36 = arith.constant 0 : index
    %c0_37 = arith.constant 0 : index
    %113 = vector.load %arg4[%c0_36, %c0_37] : memref<16x64xf32, #tpu.memory_space<vmem>>, vector<16x64xf32>
    %cst_38 = arith.constant dense<0.000000e+00> : vector<8x64xf32>
    %114 = tpu.matmul %105, %113, %cst_38 {dimension_numbers = #tpu.dot_dimension_numbers<[1], [0], [0], [1], [0, 0, 1, 1], [], []>} : vector<8x16xf32>, vector<16x64xf32>, vector<8x64xf32> -> vector<8x64xf32>
    %115 = arith.addf %112, %114 : vector<8x64xf32>
    %116 = vector.extract_strided_slice %115 {offsets = [0, 0], sizes = [8, 16], strides = [1, 1]} : vector<8x64xf32> to vector<8x16xf32>
    %117 = arith.negf %116 : vector<8x16xf32>
    %118 = math.exp %117 : vector<8x16xf32>
    %cst_39 = arith.constant 1.000000e+00 : f32
    %119 = vector.broadcast %cst_39 : f32 to vector<8x16xf32>
    %120 = arith.addf %119, %118 : vector<8x16xf32>
    %121 = arith.divf %119, %120 : vector<8x16xf32>
    %122 = vector.extract_strided_slice %115 {offsets = [0, 16], sizes = [8, 16], strides = [1, 1]} : vector<8x64xf32> to vector<8x16xf32>
    %123 = arith.negf %122 : vector<8x16xf32>
    %124 = math.exp %123 : vector<8x16xf32>
    %cst_40 = arith.constant 1.000000e+00 : f32
    %125 = vector.broadcast %cst_40 : f32 to vector<8x16xf32>
    %126 = arith.addf %125, %124 : vector<8x16xf32>
    %127 = arith.divf %125, %126 : vector<8x16xf32>
    %128 = vector.extract_strided_slice %115 {offsets = [0, 32], sizes = [8, 16], strides = [1, 1]} : vector<8x64xf32> to vector<8x16xf32>
    %129 = math.tanh %128 : vector<8x16xf32>
    %130 = vector.extract_strided_slice %115 {offsets = [0, 48], sizes = [8, 16], strides = [1, 1]} : vector<8x64xf32> to vector<8x16xf32>
    %131 = arith.negf %130 : vector<8x16xf32>
    %132 = math.exp %131 : vector<8x16xf32>
    %cst_41 = arith.constant 1.000000e+00 : f32
    %133 = vector.broadcast %cst_41 : f32 to vector<8x16xf32>
    %134 = arith.addf %133, %132 : vector<8x16xf32>
    %135 = arith.divf %133, %134 : vector<8x16xf32>
    %136 = arith.mulf %127, %103 : vector<8x16xf32>
    %137 = arith.mulf %121, %129 : vector<8x16xf32>
    %138 = arith.addf %136, %137 : vector<8x16xf32>
    %139 = math.tanh %138 : vector<8x16xf32>
    %140 = arith.mulf %135, %139 : vector<8x16xf32>
    %141 = arith.index_cast %c3_i32 : i32 to index
    %c0_42 = arith.constant 0 : index
    %c0_43 = arith.constant 0 : index
    %142 = vector.load %arg5[%141, %c0_42, %c0_43] : memref<16x8x16xf32, #tpu.memory_space<vmem>>, vector<1x8x16xf32>
    %143 = vector.shape_cast %142 : vector<1x8x16xf32> to vector<8x16xf32>
    %144 = vector.shape_cast %140 : vector<8x16xf32> to vector<1x8x16xf32>
    tpu.vector_store %arg5[%141, %c0_42, %c0_43], %144 {strides = array<i32>} : memref<16x8x16xf32, #tpu.memory_space<vmem>>, vector<1x8x16xf32>,
    %c4_i32 = arith.constant 4 : i32
    %145 = arith.index_cast %c4_i32 : i32 to index
    %c0_44 = arith.constant 0 : index
    %c0_45 = arith.constant 0 : index
    %146 = vector.load %arg1[%145, %c0_44, %c0_45] : memref<16x8x64xf32, #tpu.memory_space<vmem>>, vector<1x8x64xf32>
    %147 = vector.shape_cast %146 : vector<1x8x64xf32> to vector<8x64xf32>
    %c0_46 = arith.constant 0 : index
    %c0_47 = arith.constant 0 : index
    %148 = vector.load %arg4[%c0_46, %c0_47] : memref<16x64xf32, #tpu.memory_space<vmem>>, vector<16x64xf32>
    %cst_48 = arith.constant dense<0.000000e+00> : vector<8x64xf32>
    %149 = tpu.matmul %140, %148, %cst_48 {dimension_numbers = #tpu.dot_dimension_numbers<[1], [0], [0], [1], [0, 0, 1, 1], [], []>} : vector<8x16xf32>, vector<16x64xf32>, vector<8x64xf32> -> vector<8x64xf32>
    %150 = arith.addf %147, %149 : vector<8x64xf32>
    %151 = vector.extract_strided_slice %150 {offsets = [0, 0], sizes = [8, 16], strides = [1, 1]} : vector<8x64xf32> to vector<8x16xf32>
    %152 = arith.negf %151 : vector<8x16xf32>
    %153 = math.exp %152 : vector<8x16xf32>
    %cst_49 = arith.constant 1.000000e+00 : f32
    %154 = vector.broadcast %cst_49 : f32 to vector<8x16xf32>
    %155 = arith.addf %154, %153 : vector<8x16xf32>
    %156 = arith.divf %154, %155 : vector<8x16xf32>
    %157 = vector.extract_strided_slice %150 {offsets = [0, 16], sizes = [8, 16], strides = [1, 1]} : vector<8x64xf32> to vector<8x16xf32>
    %158 = arith.negf %157 : vector<8x16xf32>
    %159 = math.exp %158 : vector<8x16xf32>
    %cst_50 = arith.constant 1.000000e+00 : f32
    %160 = vector.broadcast %cst_50 : f32 to vector<8x16xf32>
    %161 = arith.addf %160, %159 : vector<8x16xf32>
    %162 = arith.divf %160, %161 : vector<8x16xf32>
    %163 = vector.extract_strided_slice %150 {offsets = [0, 32], sizes = [8, 16], strides = [1, 1]} : vector<8x64xf32> to vector<8x16xf32>
    %164 = math.tanh %163 : vector<8x16xf32>
    %165 = vector.extract_strided_slice %150 {offsets = [0, 48], sizes = [8, 16], strides = [1, 1]} : vector<8x64xf32> to vector<8x16xf32>
    %166 = arith.negf %165 : vector<8x16xf32>
    %167 = math.exp %166 : vector<8x16xf32>
    %cst_51 = arith.constant 1.000000e+00 : f32
    %168 = vector.broadcast %cst_51 : f32 to vector<8x16xf32>
    %169 = arith.addf %168, %167 : vector<8x16xf32>
    %170 = arith.divf %168, %169 : vector<8x16xf32>
    %171 = arith.mulf %162, %138 : vector<8x16xf32>
    %172 = arith.mulf %156, %164 : vector<8x16xf32>
    %173 = arith.addf %171, %172 : vector<8x16xf32>
    %174 = math.tanh %173 : vector<8x16xf32>
    %175 = arith.mulf %170, %174 : vector<8x16xf32>
    %176 = arith.index_cast %c4_i32 : i32 to index
    %c0_52 = arith.constant 0 : index
    %c0_53 = arith.constant 0 : index
    %177 = vector.load %arg5[%176, %c0_52, %c0_53] : memref<16x8x16xf32, #tpu.memory_space<vmem>>, vector<1x8x16xf32>
    %178 = vector.shape_cast %177 : vector<1x8x16xf32> to vector<8x16xf32>
    %179 = vector.shape_cast %175 : vector<8x16xf32> to vector<1x8x16xf32>
    tpu.vector_store %arg5[%176, %c0_52, %c0_53], %179 {strides = array<i32>} : memref<16x8x16xf32, #tpu.memory_space<vmem>>, vector<1x8x16xf32>,
    %c5_i32 = arith.constant 5 : i32
    %180 = arith.index_cast %c5_i32 : i32 to index
    %c0_54 = arith.constant 0 : index
    %c0_55 = arith.constant 0 : index
    %181 = vector.load %arg1[%180, %c0_54, %c0_55] : memref<16x8x64xf32, #tpu.memory_space<vmem>>, vector<1x8x64xf32>
    %182 = vector.shape_cast %181 : vector<1x8x64xf32> to vector<8x64xf32>
    %c0_56 = arith.constant 0 : index
    %c0_57 = arith.constant 0 : index
    %183 = vector.load %arg4[%c0_56, %c0_57] : memref<16x64xf32, #tpu.memory_space<vmem>>, vector<16x64xf32>
    %cst_58 = arith.constant dense<0.000000e+00> : vector<8x64xf32>
    %184 = tpu.matmul %175, %183, %cst_58 {dimension_numbers = #tpu.dot_dimension_numbers<[1], [0], [0], [1], [0, 0, 1, 1], [], []>} : vector<8x16xf32>, vector<16x64xf32>, vector<8x64xf32> -> vector<8x64xf32>
    %185 = arith.addf %182, %184 : vector<8x64xf32>
    %186 = vector.extract_strided_slice %185 {offsets = [0, 0], sizes = [8, 16], strides = [1, 1]} : vector<8x64xf32> to vector<8x16xf32>
    %187 = arith.negf %186 : vector<8x16xf32>
    %188 = math.exp %187 : vector<8x16xf32>
    %cst_59 = arith.constant 1.000000e+00 : f32
    %189 = vector.broadcast %cst_59 : f32 to vector<8x16xf32>
    %190 = arith.addf %189, %188 : vector<8x16xf32>
    %191 = arith.divf %189, %190 : vector<8x16xf32>
    %192 = vector.extract_strided_slice %185 {offsets = [0, 16], sizes = [8, 16], strides = [1, 1]} : vector<8x64xf32> to vector<8x16xf32>
    %193 = arith.negf %192 : vector<8x16xf32>
    %194 = math.exp %193 : vector<8x16xf32>
    %cst_60 = arith.constant 1.000000e+00 : f32
    %195 = vector.broadcast %cst_60 : f32 to vector<8x16xf32>
    %196 = arith.addf %195, %194 : vector<8x16xf32>
    %197 = arith.divf %195, %196 : vector<8x16xf32>
    %198 = vector.extract_strided_slice %185 {offsets = [0, 32], sizes = [8, 16], strides = [1, 1]} : vector<8x64xf32> to vector<8x16xf32>
    %199 = math.tanh %198 : vector<8x16xf32>
    %200 = vector.extract_strided_slice %185 {offsets = [0, 48], sizes = [8, 16], strides = [1, 1]} : vector<8x64xf32> to vector<8x16xf32>
    %201 = arith.negf %200 : vector<8x16xf32>
    %202 = math.exp %201 : vector<8x16xf32>
    %cst_61 = arith.constant 1.000000e+00 : f32
    %203 = vector.broadcast %cst_61 : f32 to vector<8x16xf32>
    %204 = arith.addf %203, %202 : vector<8x16xf32>
    %205 = arith.divf %203, %204 : vector<8x16xf32>
    %206 = arith.mulf %197, %173 : vector<8x16xf32>
    %207 = arith.mulf %191, %199 : vector<8x16xf32>
    %208 = arith.addf %206, %207 : vector<8x16xf32>
    %209 = math.tanh %208 : vector<8x16xf32>
    %210 = arith.mulf %205, %209 : vector<8x16xf32>
    %211 = arith.index_cast %c5_i32 : i32 to index
    %c0_62 = arith.constant 0 : index
    %c0_63 = arith.constant 0 : index
    %212 = vector.load %arg5[%211, %c0_62, %c0_63] : memref<16x8x16xf32, #tpu.memory_space<vmem>>, vector<1x8x16xf32>
    %213 = vector.shape_cast %212 : vector<1x8x16xf32> to vector<8x16xf32>
    %214 = vector.shape_cast %210 : vector<8x16xf32> to vector<1x8x16xf32>
    tpu.vector_store %arg5[%211, %c0_62, %c0_63], %214 {strides = array<i32>} : memref<16x8x16xf32, #tpu.memory_space<vmem>>, vector<1x8x16xf32>,
    %c6_i32 = arith.constant 6 : i32
    %215 = arith.index_cast %c6_i32 : i32 to index
    %c0_64 = arith.constant 0 : index
    %c0_65 = arith.constant 0 : index
    %216 = vector.load %arg1[%215, %c0_64, %c0_65] : memref<16x8x64xf32, #tpu.memory_space<vmem>>, vector<1x8x64xf32>
    %217 = vector.shape_cast %216 : vector<1x8x64xf32> to vector<8x64xf32>
    %c0_66 = arith.constant 0 : index
    %c0_67 = arith.constant 0 : index
    %218 = vector.load %arg4[%c0_66, %c0_67] : memref<16x64xf32, #tpu.memory_space<vmem>>, vector<16x64xf32>
    %cst_68 = arith.constant dense<0.000000e+00> : vector<8x64xf32>
    %219 = tpu.matmul %210, %218, %cst_68 {dimension_numbers = #tpu.dot_dimension_numbers<[1], [0], [0], [1], [0, 0, 1, 1], [], []>} : vector<8x16xf32>, vector<16x64xf32>, vector<8x64xf32> -> vector<8x64xf32>
    %220 = arith.addf %217, %219 : vector<8x64xf32>
    %221 = vector.extract_strided_slice %220 {offsets = [0, 0], sizes = [8, 16], strides = [1, 1]} : vector<8x64xf32> to vector<8x16xf32>
    %222 = arith.negf %221 : vector<8x16xf32>
    %223 = math.exp %222 : vector<8x16xf32>
    %cst_69 = arith.constant 1.000000e+00 : f32
    %224 = vector.broadcast %cst_69 : f32 to vector<8x16xf32>
    %225 = arith.addf %224, %223 : vector<8x16xf32>
    %226 = arith.divf %224, %225 : vector<8x16xf32>
    %227 = vector.extract_strided_slice %220 {offsets = [0, 16], sizes = [8, 16], strides = [1, 1]} : vector<8x64xf32> to vector<8x16xf32>
    %228 = arith.negf %227 : vector<8x16xf32>
    %229 = math.exp %228 : vector<8x16xf32>
    %cst_70 = arith.constant 1.000000e+00 : f32
    %230 = vector.broadcast %cst_70 : f32 to vector<8x16xf32>
    %231 = arith.addf %230, %229 : vector<8x16xf32>
    %232 = arith.divf %230, %231 : vector<8x16xf32>
    %233 = vector.extract_strided_slice %220 {offsets = [0, 32], sizes = [8, 16], strides = [1, 1]} : vector<8x64xf32> to vector<8x16xf32>
    %234 = math.tanh %233 : vector<8x16xf32>
    %235 = vector.extract_strided_slice %220 {offsets = [0, 48], sizes = [8, 16], strides = [1, 1]} : vector<8x64xf32> to vector<8x16xf32>
    %236 = arith.negf %235 : vector<8x16xf32>
    %237 = math.exp %236 : vector<8x16xf32>
    %cst_71 = arith.constant 1.000000e+00 : f32
    %238 = vector.broadcast %cst_71 : f32 to vector<8x16xf32>
    %239 = arith.addf %238, %237 : vector<8x16xf32>
    %240 = arith.divf %238, %239 : vector<8x16xf32>
    %241 = arith.mulf %232, %208 : vector<8x16xf32>
    %242 = arith.mulf %226, %234 : vector<8x16xf32>
    %243 = arith.addf %241, %242 : vector<8x16xf32>
    %244 = math.tanh %243 : vector<8x16xf32>
    %245 = arith.mulf %240, %244 : vector<8x16xf32>
    %246 = arith.index_cast %c6_i32 : i32 to index
    %c0_72 = arith.constant 0 : index
    %c0_73 = arith.constant 0 : index
    %247 = vector.load %arg5[%246, %c0_72, %c0_73] : memref<16x8x16xf32, #tpu.memory_space<vmem>>, vector<1x8x16xf32>
    %248 = vector.shape_cast %247 : vector<1x8x16xf32> to vector<8x16xf32>
    %249 = vector.shape_cast %245 : vector<8x16xf32> to vector<1x8x16xf32>
    tpu.vector_store %arg5[%246, %c0_72, %c0_73], %249 {strides = array<i32>} : memref<16x8x16xf32, #tpu.memory_space<vmem>>, vector<1x8x16xf32>,
    %c7_i32 = arith.constant 7 : i32
    %250 = arith.index_cast %c7_i32 : i32 to index
    %c0_74 = arith.constant 0 : index
    %c0_75 = arith.constant 0 : index
    %251 = vector.load %arg1[%250, %c0_74, %c0_75] : memref<16x8x64xf32, #tpu.memory_space<vmem>>, vector<1x8x64xf32>
    %252 = vector.shape_cast %251 : vector<1x8x64xf32> to vector<8x64xf32>
    %c0_76 = arith.constant 0 : index
    %c0_77 = arith.constant 0 : index
    %253 = vector.load %arg4[%c0_76, %c0_77] : memref<16x64xf32, #tpu.memory_space<vmem>>, vector<16x64xf32>
    %cst_78 = arith.constant dense<0.000000e+00> : vector<8x64xf32>
    %254 = tpu.matmul %245, %253, %cst_78 {dimension_numbers = #tpu.dot_dimension_numbers<[1], [0], [0], [1], [0, 0, 1, 1], [], []>} : vector<8x16xf32>, vector<16x64xf32>, vector<8x64xf32> -> vector<8x64xf32>
    %255 = arith.addf %252, %254 : vector<8x64xf32>
    %256 = vector.extract_strided_slice %255 {offsets = [0, 0], sizes = [8, 16], strides = [1, 1]} : vector<8x64xf32> to vector<8x16xf32>
    %257 = arith.negf %256 : vector<8x16xf32>
    %258 = math.exp %257 : vector<8x16xf32>
    %cst_79 = arith.constant 1.000000e+00 : f32
    %259 = vector.broadcast %cst_79 : f32 to vector<8x16xf32>
    %260 = arith.addf %259, %258 : vector<8x16xf32>
    %261 = arith.divf %259, %260 : vector<8x16xf32>
    %262 = vector.extract_strided_slice %255 {offsets = [0, 16], sizes = [8, 16], strides = [1, 1]} : vector<8x64xf32> to vector<8x16xf32>
    %263 = arith.negf %262 : vector<8x16xf32>
    %264 = math.exp %263 : vector<8x16xf32>
    %cst_80 = arith.constant 1.000000e+00 : f32
    %265 = vector.broadcast %cst_80 : f32 to vector<8x16xf32>
    %266 = arith.addf %265, %264 : vector<8x16xf32>
    %267 = arith.divf %265, %266 : vector<8x16xf32>
    %268 = vector.extract_strided_slice %255 {offsets = [0, 32], sizes = [8, 16], strides = [1, 1]} : vector<8x64xf32> to vector<8x16xf32>
    %269 = math.tanh %268 : vector<8x16xf32>
    %270 = vector.extract_strided_slice %255 {offsets = [0, 48], sizes = [8, 16], strides = [1, 1]} : vector<8x64xf32> to vector<8x16xf32>
    %271 = arith.negf %270 : vector<8x16xf32>
    %272 = math.exp %271 : vector<8x16xf32>
    %cst_81 = arith.constant 1.000000e+00 : f32
    %273 = vector.broadcast %cst_81 : f32 to vector<8x16xf32>
    %274 = arith.addf %273, %272 : vector<8x16xf32>
    %275 = arith.divf %273, %274 : vector<8x16xf32>
    %276 = arith.mulf %267, %243 : vector<8x16xf32>
    %277 = arith.mulf %261, %269 : vector<8x16xf32>
    %278 = arith.addf %276, %277 : vector<8x16xf32>
    %279 = math.tanh %278 : vector<8x16xf32>
    %280 = arith.mulf %275, %279 : vector<8x16xf32>
    %281 = arith.index_cast %c7_i32 : i32 to index
    %c0_82 = arith.constant 0 : index
    %c0_83 = arith.constant 0 : index
    %282 = vector.load %arg5[%281, %c0_82, %c0_83] : memref<16x8x16xf32, #tpu.memory_space<vmem>>, vector<1x8x16xf32>
    %283 = vector.shape_cast %282 : vector<1x8x16xf32> to vector<8x16xf32>
    %284 = vector.shape_cast %280 : vector<8x16xf32> to vector<1x8x16xf32>
    tpu.vector_store %arg5[%281, %c0_82, %c0_83], %284 {strides = array<i32>} : memref<16x8x16xf32, #tpu.memory_space<vmem>>, vector<1x8x16xf32>,
    %c8_i32 = arith.constant 8 : i32
    %285 = arith.index_cast %c8_i32 : i32 to index
    %c0_84 = arith.constant 0 : index
    %c0_85 = arith.constant 0 : index
    %286 = vector.load %arg1[%285, %c0_84, %c0_85] : memref<16x8x64xf32, #tpu.memory_space<vmem>>, vector<1x8x64xf32>
    %287 = vector.shape_cast %286 : vector<1x8x64xf32> to vector<8x64xf32>
    %c0_86 = arith.constant 0 : index
    %c0_87 = arith.constant 0 : index
    %288 = vector.load %arg4[%c0_86, %c0_87] : memref<16x64xf32, #tpu.memory_space<vmem>>, vector<16x64xf32>
    %cst_88 = arith.constant dense<0.000000e+00> : vector<8x64xf32>
    %289 = tpu.matmul %280, %288, %cst_88 {dimension_numbers = #tpu.dot_dimension_numbers<[1], [0], [0], [1], [0, 0, 1, 1], [], []>} : vector<8x16xf32>, vector<16x64xf32>, vector<8x64xf32> -> vector<8x64xf32>
    %290 = arith.addf %287, %289 : vector<8x64xf32>
    %291 = vector.extract_strided_slice %290 {offsets = [0, 0], sizes = [8, 16], strides = [1, 1]} : vector<8x64xf32> to vector<8x16xf32>
    %292 = arith.negf %291 : vector<8x16xf32>
    %293 = math.exp %292 : vector<8x16xf32>
    %cst_89 = arith.constant 1.000000e+00 : f32
    %294 = vector.broadcast %cst_89 : f32 to vector<8x16xf32>
    %295 = arith.addf %294, %293 : vector<8x16xf32>
    %296 = arith.divf %294, %295 : vector<8x16xf32>
    %297 = vector.extract_strided_slice %290 {offsets = [0, 16], sizes = [8, 16], strides = [1, 1]} : vector<8x64xf32> to vector<8x16xf32>
    %298 = arith.negf %297 : vector<8x16xf32>
    %299 = math.exp %298 : vector<8x16xf32>
    %cst_90 = arith.constant 1.000000e+00 : f32
    %300 = vector.broadcast %cst_90 : f32 to vector<8x16xf32>
    %301 = arith.addf %300, %299 : vector<8x16xf32>
    %302 = arith.divf %300, %301 : vector<8x16xf32>
    %303 = vector.extract_strided_slice %290 {offsets = [0, 32], sizes = [8, 16], strides = [1, 1]} : vector<8x64xf32> to vector<8x16xf32>
    %304 = math.tanh %303 : vector<8x16xf32>
    %305 = vector.extract_strided_slice %290 {offsets = [0, 48], sizes = [8, 16], strides = [1, 1]} : vector<8x64xf32> to vector<8x16xf32>
    %306 = arith.negf %305 : vector<8x16xf32>
    %307 = math.exp %306 : vector<8x16xf32>
    %cst_91 = arith.constant 1.000000e+00 : f32
    %308 = vector.broadcast %cst_91 : f32 to vector<8x16xf32>
    %309 = arith.addf %308, %307 : vector<8x16xf32>
    %310 = arith.divf %308, %309 : vector<8x16xf32>
    %311 = arith.mulf %302, %278 : vector<8x16xf32>
    %312 = arith.mulf %296, %304 : vector<8x16xf32>
    %313 = arith.addf %311, %312 : vector<8x16xf32>
    %314 = math.tanh %313 : vector<8x16xf32>
    %315 = arith.mulf %310, %314 : vector<8x16xf32>
    %316 = arith.index_cast %c8_i32 : i32 to index
    %c0_92 = arith.constant 0 : index
    %c0_93 = arith.constant 0 : index
    %317 = vector.load %arg5[%316, %c0_92, %c0_93] : memref<16x8x16xf32, #tpu.memory_space<vmem>>, vector<1x8x16xf32>
    %318 = vector.shape_cast %317 : vector<1x8x16xf32> to vector<8x16xf32>
    %319 = vector.shape_cast %315 : vector<8x16xf32> to vector<1x8x16xf32>
    tpu.vector_store %arg5[%316, %c0_92, %c0_93], %319 {strides = array<i32>} : memref<16x8x16xf32, #tpu.memory_space<vmem>>, vector<1x8x16xf32>,
    %c9_i32 = arith.constant 9 : i32
    %320 = arith.index_cast %c9_i32 : i32 to index
    %c0_94 = arith.constant 0 : index
    %c0_95 = arith.constant 0 : index
    %321 = vector.load %arg1[%320, %c0_94, %c0_95] : memref<16x8x64xf32, #tpu.memory_space<vmem>>, vector<1x8x64xf32>
    %322 = vector.shape_cast %321 : vector<1x8x64xf32> to vector<8x64xf32>
    %c0_96 = arith.constant 0 : index
    %c0_97 = arith.constant 0 : index
    %323 = vector.load %arg4[%c0_96, %c0_97] : memref<16x64xf32, #tpu.memory_space<vmem>>, vector<16x64xf32>
    %cst_98 = arith.constant dense<0.000000e+00> : vector<8x64xf32>
    %324 = tpu.matmul %315, %323, %cst_98 {dimension_numbers = #tpu.dot_dimension_numbers<[1], [0], [0], [1], [0, 0, 1, 1], [], []>} : vector<8x16xf32>, vector<16x64xf32>, vector<8x64xf32> -> vector<8x64xf32>
    %325 = arith.addf %322, %324 : vector<8x64xf32>
    %326 = vector.extract_strided_slice %325 {offsets = [0, 0], sizes = [8, 16], strides = [1, 1]} : vector<8x64xf32> to vector<8x16xf32>
    %327 = arith.negf %326 : vector<8x16xf32>
    %328 = math.exp %327 : vector<8x16xf32>
    %cst_99 = arith.constant 1.000000e+00 : f32
    %329 = vector.broadcast %cst_99 : f32 to vector<8x16xf32>
    %330 = arith.addf %329, %328 : vector<8x16xf32>
    %331 = arith.divf %329, %330 : vector<8x16xf32>
    %332 = vector.extract_strided_slice %325 {offsets = [0, 16], sizes = [8, 16], strides = [1, 1]} : vector<8x64xf32> to vector<8x16xf32>
    %333 = arith.negf %332 : vector<8x16xf32>
    %334 = math.exp %333 : vector<8x16xf32>
    %cst_100 = arith.constant 1.000000e+00 : f32
    %335 = vector.broadcast %cst_100 : f32 to vector<8x16xf32>
    %336 = arith.addf %335, %334 : vector<8x16xf32>
    %337 = arith.divf %335, %336 : vector<8x16xf32>
    %338 = vector.extract_strided_slice %325 {offsets = [0, 32], sizes = [8, 16], strides = [1, 1]} : vector<8x64xf32> to vector<8x16xf32>
    %339 = math.tanh %338 : vector<8x16xf32>
    %340 = vector.extract_strided_slice %325 {offsets = [0, 48], sizes = [8, 16], strides = [1, 1]} : vector<8x64xf32> to vector<8x16xf32>
    %341 = arith.negf %340 : vector<8x16xf32>
    %342 = math.exp %341 : vector<8x16xf32>
    %cst_101 = arith.constant 1.000000e+00 : f32
    %343 = vector.broadcast %cst_101 : f32 to vector<8x16xf32>
    %344 = arith.addf %343, %342 : vector<8x16xf32>
    %345 = arith.divf %343, %344 : vector<8x16xf32>
    %346 = arith.mulf %337, %313 : vector<8x16xf32>
    %347 = arith.mulf %331, %339 : vector<8x16xf32>
    %348 = arith.addf %346, %347 : vector<8x16xf32>
    %349 = math.tanh %348 : vector<8x16xf32>
    %350 = arith.mulf %345, %349 : vector<8x16xf32>
    %351 = arith.index_cast %c9_i32 : i32 to index
    %c0_102 = arith.constant 0 : index
    %c0_103 = arith.constant 0 : index
    %352 = vector.load %arg5[%351, %c0_102, %c0_103] : memref<16x8x16xf32, #tpu.memory_space<vmem>>, vector<1x8x16xf32>
    %353 = vector.shape_cast %352 : vector<1x8x16xf32> to vector<8x16xf32>
    %354 = vector.shape_cast %350 : vector<8x16xf32> to vector<1x8x16xf32>
    tpu.vector_store %arg5[%351, %c0_102, %c0_103], %354 {strides = array<i32>} : memref<16x8x16xf32, #tpu.memory_space<vmem>>, vector<1x8x16xf32>,
    %c10_i32 = arith.constant 10 : i32
    %355 = arith.index_cast %c10_i32 : i32 to index
    %c0_104 = arith.constant 0 : index
    %c0_105 = arith.constant 0 : index
    %356 = vector.load %arg1[%355, %c0_104, %c0_105] : memref<16x8x64xf32, #tpu.memory_space<vmem>>, vector<1x8x64xf32>
    %357 = vector.shape_cast %356 : vector<1x8x64xf32> to vector<8x64xf32>
    %c0_106 = arith.constant 0 : index
    %c0_107 = arith.constant 0 : index
    %358 = vector.load %arg4[%c0_106, %c0_107] : memref<16x64xf32, #tpu.memory_space<vmem>>, vector<16x64xf32>
    %cst_108 = arith.constant dense<0.000000e+00> : vector<8x64xf32>
    %359 = tpu.matmul %350, %358, %cst_108 {dimension_numbers = #tpu.dot_dimension_numbers<[1], [0], [0], [1], [0, 0, 1, 1], [], []>} : vector<8x16xf32>, vector<16x64xf32>, vector<8x64xf32> -> vector<8x64xf32>
    %360 = arith.addf %357, %359 : vector<8x64xf32>
    %361 = vector.extract_strided_slice %360 {offsets = [0, 0], sizes = [8, 16], strides = [1, 1]} : vector<8x64xf32> to vector<8x16xf32>
    %362 = arith.negf %361 : vector<8x16xf32>
    %363 = math.exp %362 : vector<8x16xf32>
    %cst_109 = arith.constant 1.000000e+00 : f32
    %364 = vector.broadcast %cst_109 : f32 to vector<8x16xf32>
    %365 = arith.addf %364, %363 : vector<8x16xf32>
    %366 = arith.divf %364, %365 : vector<8x16xf32>
    %367 = vector.extract_strided_slice %360 {offsets = [0, 16], sizes = [8, 16], strides = [1, 1]} : vector<8x64xf32> to vector<8x16xf32>
    %368 = arith.negf %367 : vector<8x16xf32>
    %369 = math.exp %368 : vector<8x16xf32>
    %cst_110 = arith.constant 1.000000e+00 : f32
    %370 = vector.broadcast %cst_110 : f32 to vector<8x16xf32>
    %371 = arith.addf %370, %369 : vector<8x16xf32>
    %372 = arith.divf %370, %371 : vector<8x16xf32>
    %373 = vector.extract_strided_slice %360 {offsets = [0, 32], sizes = [8, 16], strides = [1, 1]} : vector<8x64xf32> to vector<8x16xf32>
    %374 = math.tanh %373 : vector<8x16xf32>
    %375 = vector.extract_strided_slice %360 {offsets = [0, 48], sizes = [8, 16], strides = [1, 1]} : vector<8x64xf32> to vector<8x16xf32>
    %376 = arith.negf %375 : vector<8x16xf32>
    %377 = math.exp %376 : vector<8x16xf32>
    %cst_111 = arith.constant 1.000000e+00 : f32
    %378 = vector.broadcast %cst_111 : f32 to vector<8x16xf32>
    %379 = arith.addf %378, %377 : vector<8x16xf32>
    %380 = arith.divf %378, %379 : vector<8x16xf32>
    %381 = arith.mulf %372, %348 : vector<8x16xf32>
    %382 = arith.mulf %366, %374 : vector<8x16xf32>
    %383 = arith.addf %381, %382 : vector<8x16xf32>
    %384 = math.tanh %383 : vector<8x16xf32>
    %385 = arith.mulf %380, %384 : vector<8x16xf32>
    %386 = arith.index_cast %c10_i32 : i32 to index
    %c0_112 = arith.constant 0 : index
    %c0_113 = arith.constant 0 : index
    %387 = vector.load %arg5[%386, %c0_112, %c0_113] : memref<16x8x16xf32, #tpu.memory_space<vmem>>, vector<1x8x16xf32>
    %388 = vector.shape_cast %387 : vector<1x8x16xf32> to vector<8x16xf32>
    %389 = vector.shape_cast %385 : vector<8x16xf32> to vector<1x8x16xf32>
    tpu.vector_store %arg5[%386, %c0_112, %c0_113], %389 {strides = array<i32>} : memref<16x8x16xf32, #tpu.memory_space<vmem>>, vector<1x8x16xf32>,
    %c11_i32 = arith.constant 11 : i32
    %390 = arith.index_cast %c11_i32 : i32 to index
    %c0_114 = arith.constant 0 : index
    %c0_115 = arith.constant 0 : index
    %391 = vector.load %arg1[%390, %c0_114, %c0_115] : memref<16x8x64xf32, #tpu.memory_space<vmem>>, vector<1x8x64xf32>
    %392 = vector.shape_cast %391 : vector<1x8x64xf32> to vector<8x64xf32>
    %c0_116 = arith.constant 0 : index
    %c0_117 = arith.constant 0 : index
    %393 = vector.load %arg4[%c0_116, %c0_117] : memref<16x64xf32, #tpu.memory_space<vmem>>, vector<16x64xf32>
    %cst_118 = arith.constant dense<0.000000e+00> : vector<8x64xf32>
    %394 = tpu.matmul %385, %393, %cst_118 {dimension_numbers = #tpu.dot_dimension_numbers<[1], [0], [0], [1], [0, 0, 1, 1], [], []>} : vector<8x16xf32>, vector<16x64xf32>, vector<8x64xf32> -> vector<8x64xf32>
    %395 = arith.addf %392, %394 : vector<8x64xf32>
    %396 = vector.extract_strided_slice %395 {offsets = [0, 0], sizes = [8, 16], strides = [1, 1]} : vector<8x64xf32> to vector<8x16xf32>
    %397 = arith.negf %396 : vector<8x16xf32>
    %398 = math.exp %397 : vector<8x16xf32>
    %cst_119 = arith.constant 1.000000e+00 : f32
    %399 = vector.broadcast %cst_119 : f32 to vector<8x16xf32>
    %400 = arith.addf %399, %398 : vector<8x16xf32>
    %401 = arith.divf %399, %400 : vector<8x16xf32>
    %402 = vector.extract_strided_slice %395 {offsets = [0, 16], sizes = [8, 16], strides = [1, 1]} : vector<8x64xf32> to vector<8x16xf32>
    %403 = arith.negf %402 : vector<8x16xf32>
    %404 = math.exp %403 : vector<8x16xf32>
    %cst_120 = arith.constant 1.000000e+00 : f32
    %405 = vector.broadcast %cst_120 : f32 to vector<8x16xf32>
    %406 = arith.addf %405, %404 : vector<8x16xf32>
    %407 = arith.divf %405, %406 : vector<8x16xf32>
    %408 = vector.extract_strided_slice %395 {offsets = [0, 32], sizes = [8, 16], strides = [1, 1]} : vector<8x64xf32> to vector<8x16xf32>
    %409 = math.tanh %408 : vector<8x16xf32>
    %410 = vector.extract_strided_slice %395 {offsets = [0, 48], sizes = [8, 16], strides = [1, 1]} : vector<8x64xf32> to vector<8x16xf32>
    %411 = arith.negf %410 : vector<8x16xf32>
    %412 = math.exp %411 : vector<8x16xf32>
    %cst_121 = arith.constant 1.000000e+00 : f32
    %413 = vector.broadcast %cst_121 : f32 to vector<8x16xf32>
    %414 = arith.addf %413, %412 : vector<8x16xf32>
    %415 = arith.divf %413, %414 : vector<8x16xf32>
    %416 = arith.mulf %407, %383 : vector<8x16xf32>
    %417 = arith.mulf %401, %409 : vector<8x16xf32>
    %418 = arith.addf %416, %417 : vector<8x16xf32>
    %419 = math.tanh %418 : vector<8x16xf32>
    %420 = arith.mulf %415, %419 : vector<8x16xf32>
    %421 = arith.index_cast %c11_i32 : i32 to index
    %c0_122 = arith.constant 0 : index
    %c0_123 = arith.constant 0 : index
    %422 = vector.load %arg5[%421, %c0_122, %c0_123] : memref<16x8x16xf32, #tpu.memory_space<vmem>>, vector<1x8x16xf32>
    %423 = vector.shape_cast %422 : vector<1x8x16xf32> to vector<8x16xf32>
    %424 = vector.shape_cast %420 : vector<8x16xf32> to vector<1x8x16xf32>
    tpu.vector_store %arg5[%421, %c0_122, %c0_123], %424 {strides = array<i32>} : memref<16x8x16xf32, #tpu.memory_space<vmem>>, vector<1x8x16xf32>,
    %c12_i32 = arith.constant 12 : i32
    %425 = arith.index_cast %c12_i32 : i32 to index
    %c0_124 = arith.constant 0 : index
    %c0_125 = arith.constant 0 : index
    %426 = vector.load %arg1[%425, %c0_124, %c0_125] : memref<16x8x64xf32, #tpu.memory_space<vmem>>, vector<1x8x64xf32>
    %427 = vector.shape_cast %426 : vector<1x8x64xf32> to vector<8x64xf32>
    %c0_126 = arith.constant 0 : index
    %c0_127 = arith.constant 0 : index
    %428 = vector.load %arg4[%c0_126, %c0_127] : memref<16x64xf32, #tpu.memory_space<vmem>>, vector<16x64xf32>
    %cst_128 = arith.constant dense<0.000000e+00> : vector<8x64xf32>
    %429 = tpu.matmul %420, %428, %cst_128 {dimension_numbers = #tpu.dot_dimension_numbers<[1], [0], [0], [1], [0, 0, 1, 1], [], []>} : vector<8x16xf32>, vector<16x64xf32>, vector<8x64xf32> -> vector<8x64xf32>
    %430 = arith.addf %427, %429 : vector<8x64xf32>
    %431 = vector.extract_strided_slice %430 {offsets = [0, 0], sizes = [8, 16], strides = [1, 1]} : vector<8x64xf32> to vector<8x16xf32>
    %432 = arith.negf %431 : vector<8x16xf32>
    %433 = math.exp %432 : vector<8x16xf32>
    %cst_129 = arith.constant 1.000000e+00 : f32
    %434 = vector.broadcast %cst_129 : f32 to vector<8x16xf32>
    %435 = arith.addf %434, %433 : vector<8x16xf32>
    %436 = arith.divf %434, %435 : vector<8x16xf32>
    %437 = vector.extract_strided_slice %430 {offsets = [0, 16], sizes = [8, 16], strides = [1, 1]} : vector<8x64xf32> to vector<8x16xf32>
    %438 = arith.negf %437 : vector<8x16xf32>
    %439 = math.exp %438 : vector<8x16xf32>
    %cst_130 = arith.constant 1.000000e+00 : f32
    %440 = vector.broadcast %cst_130 : f32 to vector<8x16xf32>
    %441 = arith.addf %440, %439 : vector<8x16xf32>
    %442 = arith.divf %440, %441 : vector<8x16xf32>
    %443 = vector.extract_strided_slice %430 {offsets = [0, 32], sizes = [8, 16], strides = [1, 1]} : vector<8x64xf32> to vector<8x16xf32>
    %444 = math.tanh %443 : vector<8x16xf32>
    %445 = vector.extract_strided_slice %430 {offsets = [0, 48], sizes = [8, 16], strides = [1, 1]} : vector<8x64xf32> to vector<8x16xf32>
    %446 = arith.negf %445 : vector<8x16xf32>
    %447 = math.exp %446 : vector<8x16xf32>
    %cst_131 = arith.constant 1.000000e+00 : f32
    %448 = vector.broadcast %cst_131 : f32 to vector<8x16xf32>
    %449 = arith.addf %448, %447 : vector<8x16xf32>
    %450 = arith.divf %448, %449 : vector<8x16xf32>
    %451 = arith.mulf %442, %418 : vector<8x16xf32>
    %452 = arith.mulf %436, %444 : vector<8x16xf32>
    %453 = arith.addf %451, %452 : vector<8x16xf32>
    %454 = math.tanh %453 : vector<8x16xf32>
    %455 = arith.mulf %450, %454 : vector<8x16xf32>
    %456 = arith.index_cast %c12_i32 : i32 to index
    %c0_132 = arith.constant 0 : index
    %c0_133 = arith.constant 0 : index
    %457 = vector.load %arg5[%456, %c0_132, %c0_133] : memref<16x8x16xf32, #tpu.memory_space<vmem>>, vector<1x8x16xf32>
    %458 = vector.shape_cast %457 : vector<1x8x16xf32> to vector<8x16xf32>
    %459 = vector.shape_cast %455 : vector<8x16xf32> to vector<1x8x16xf32>
    tpu.vector_store %arg5[%456, %c0_132, %c0_133], %459 {strides = array<i32>} : memref<16x8x16xf32, #tpu.memory_space<vmem>>, vector<1x8x16xf32>,
    %c13_i32 = arith.constant 13 : i32
    %460 = arith.index_cast %c13_i32 : i32 to index
    %c0_134 = arith.constant 0 : index
    %c0_135 = arith.constant 0 : index
    %461 = vector.load %arg1[%460, %c0_134, %c0_135] : memref<16x8x64xf32, #tpu.memory_space<vmem>>, vector<1x8x64xf32>
    %462 = vector.shape_cast %461 : vector<1x8x64xf32> to vector<8x64xf32>
    %c0_136 = arith.constant 0 : index
    %c0_137 = arith.constant 0 : index
    %463 = vector.load %arg4[%c0_136, %c0_137] : memref<16x64xf32, #tpu.memory_space<vmem>>, vector<16x64xf32>
    %cst_138 = arith.constant dense<0.000000e+00> : vector<8x64xf32>
    %464 = tpu.matmul %455, %463, %cst_138 {dimension_numbers = #tpu.dot_dimension_numbers<[1], [0], [0], [1], [0, 0, 1, 1], [], []>} : vector<8x16xf32>, vector<16x64xf32>, vector<8x64xf32> -> vector<8x64xf32>
    %465 = arith.addf %462, %464 : vector<8x64xf32>
    %466 = vector.extract_strided_slice %465 {offsets = [0, 0], sizes = [8, 16], strides = [1, 1]} : vector<8x64xf32> to vector<8x16xf32>
    %467 = arith.negf %466 : vector<8x16xf32>
    %468 = math.exp %467 : vector<8x16xf32>
    %cst_139 = arith.constant 1.000000e+00 : f32
    %469 = vector.broadcast %cst_139 : f32 to vector<8x16xf32>
    %470 = arith.addf %469, %468 : vector<8x16xf32>
    %471 = arith.divf %469, %470 : vector<8x16xf32>
    %472 = vector.extract_strided_slice %465 {offsets = [0, 16], sizes = [8, 16], strides = [1, 1]} : vector<8x64xf32> to vector<8x16xf32>
    %473 = arith.negf %472 : vector<8x16xf32>
    %474 = math.exp %473 : vector<8x16xf32>
    %cst_140 = arith.constant 1.000000e+00 : f32
    %475 = vector.broadcast %cst_140 : f32 to vector<8x16xf32>
    %476 = arith.addf %475, %474 : vector<8x16xf32>
    %477 = arith.divf %475, %476 : vector<8x16xf32>
    %478 = vector.extract_strided_slice %465 {offsets = [0, 32], sizes = [8, 16], strides = [1, 1]} : vector<8x64xf32> to vector<8x16xf32>
    %479 = math.tanh %478 : vector<8x16xf32>
    %480 = vector.extract_strided_slice %465 {offsets = [0, 48], sizes = [8, 16], strides = [1, 1]} : vector<8x64xf32> to vector<8x16xf32>
    %481 = arith.negf %480 : vector<8x16xf32>
    %482 = math.exp %481 : vector<8x16xf32>
    %cst_141 = arith.constant 1.000000e+00 : f32
    %483 = vector.broadcast %cst_141 : f32 to vector<8x16xf32>
    %484 = arith.addf %483, %482 : vector<8x16xf32>
    %485 = arith.divf %483, %484 : vector<8x16xf32>
    %486 = arith.mulf %477, %453 : vector<8x16xf32>
    %487 = arith.mulf %471, %479 : vector<8x16xf32>
    %488 = arith.addf %486, %487 : vector<8x16xf32>
    %489 = math.tanh %488 : vector<8x16xf32>
    %490 = arith.mulf %485, %489 : vector<8x16xf32>
    %491 = arith.index_cast %c13_i32 : i32 to index
    %c0_142 = arith.constant 0 : index
    %c0_143 = arith.constant 0 : index
    %492 = vector.load %arg5[%491, %c0_142, %c0_143] : memref<16x8x16xf32, #tpu.memory_space<vmem>>, vector<1x8x16xf32>
    %493 = vector.shape_cast %492 : vector<1x8x16xf32> to vector<8x16xf32>
    %494 = vector.shape_cast %490 : vector<8x16xf32> to vector<1x8x16xf32>
    tpu.vector_store %arg5[%491, %c0_142, %c0_143], %494 {strides = array<i32>} : memref<16x8x16xf32, #tpu.memory_space<vmem>>, vector<1x8x16xf32>,
    %c14_i32 = arith.constant 14 : i32
    %495 = arith.index_cast %c14_i32 : i32 to index
    %c0_144 = arith.constant 0 : index
    %c0_145 = arith.constant 0 : index
    %496 = vector.load %arg1[%495, %c0_144, %c0_145] : memref<16x8x64xf32, #tpu.memory_space<vmem>>, vector<1x8x64xf32>
    %497 = vector.shape_cast %496 : vector<1x8x64xf32> to vector<8x64xf32>
    %c0_146 = arith.constant 0 : index
    %c0_147 = arith.constant 0 : index
    %498 = vector.load %arg4[%c0_146, %c0_147] : memref<16x64xf32, #tpu.memory_space<vmem>>, vector<16x64xf32>
    %cst_148 = arith.constant dense<0.000000e+00> : vector<8x64xf32>
    %499 = tpu.matmul %490, %498, %cst_148 {dimension_numbers = #tpu.dot_dimension_numbers<[1], [0], [0], [1], [0, 0, 1, 1], [], []>} : vector<8x16xf32>, vector<16x64xf32>, vector<8x64xf32> -> vector<8x64xf32>
    %500 = arith.addf %497, %499 : vector<8x64xf32>
    %501 = vector.extract_strided_slice %500 {offsets = [0, 0], sizes = [8, 16], strides = [1, 1]} : vector<8x64xf32> to vector<8x16xf32>
    %502 = arith.negf %501 : vector<8x16xf32>
    %503 = math.exp %502 : vector<8x16xf32>
    %cst_149 = arith.constant 1.000000e+00 : f32
    %504 = vector.broadcast %cst_149 : f32 to vector<8x16xf32>
    %505 = arith.addf %504, %503 : vector<8x16xf32>
    %506 = arith.divf %504, %505 : vector<8x16xf32>
    %507 = vector.extract_strided_slice %500 {offsets = [0, 16], sizes = [8, 16], strides = [1, 1]} : vector<8x64xf32> to vector<8x16xf32>
    %508 = arith.negf %507 : vector<8x16xf32>
    %509 = math.exp %508 : vector<8x16xf32>
    %cst_150 = arith.constant 1.000000e+00 : f32
    %510 = vector.broadcast %cst_150 : f32 to vector<8x16xf32>
    %511 = arith.addf %510, %509 : vector<8x16xf32>
    %512 = arith.divf %510, %511 : vector<8x16xf32>
    %513 = vector.extract_strided_slice %500 {offsets = [0, 32], sizes = [8, 16], strides = [1, 1]} : vector<8x64xf32> to vector<8x16xf32>
    %514 = math.tanh %513 : vector<8x16xf32>
    %515 = vector.extract_strided_slice %500 {offsets = [0, 48], sizes = [8, 16], strides = [1, 1]} : vector<8x64xf32> to vector<8x16xf32>
    %516 = arith.negf %515 : vector<8x16xf32>
    %517 = math.exp %516 : vector<8x16xf32>
    %cst_151 = arith.constant 1.000000e+00 : f32
    %518 = vector.broadcast %cst_151 : f32 to vector<8x16xf32>
    %519 = arith.addf %518, %517 : vector<8x16xf32>
    %520 = arith.divf %518, %519 : vector<8x16xf32>
    %521 = arith.mulf %512, %488 : vector<8x16xf32>
    %522 = arith.mulf %506, %514 : vector<8x16xf32>
    %523 = arith.addf %521, %522 : vector<8x16xf32>
    %524 = math.tanh %523 : vector<8x16xf32>
    %525 = arith.mulf %520, %524 : vector<8x16xf32>
    %526 = arith.index_cast %c14_i32 : i32 to index
    %c0_152 = arith.constant 0 : index
    %c0_153 = arith.constant 0 : index
    %527 = vector.load %arg5[%526, %c0_152, %c0_153] : memref<16x8x16xf32, #tpu.memory_space<vmem>>, vector<1x8x16xf32>
    %528 = vector.shape_cast %527 : vector<1x8x16xf32> to vector<8x16xf32>
    %529 = vector.shape_cast %525 : vector<8x16xf32> to vector<1x8x16xf32>
    tpu.vector_store %arg5[%526, %c0_152, %c0_153], %529 {strides = array<i32>} : memref<16x8x16xf32, #tpu.memory_space<vmem>>, vector<1x8x16xf32>,
    %c15_i32 = arith.constant 15 : i32
    %530 = arith.index_cast %c15_i32 : i32 to index
    %c0_154 = arith.constant 0 : index
    %c0_155 = arith.constant 0 : index
    %531 = vector.load %arg1[%530, %c0_154, %c0_155] : memref<16x8x64xf32, #tpu.memory_space<vmem>>, vector<1x8x64xf32>
    %532 = vector.shape_cast %531 : vector<1x8x64xf32> to vector<8x64xf32>
    %c0_156 = arith.constant 0 : index
    %c0_157 = arith.constant 0 : index
    %533 = vector.load %arg4[%c0_156, %c0_157] : memref<16x64xf32, #tpu.memory_space<vmem>>, vector<16x64xf32>
    %cst_158 = arith.constant dense<0.000000e+00> : vector<8x64xf32>
    %534 = tpu.matmul %525, %533, %cst_158 {dimension_numbers = #tpu.dot_dimension_numbers<[1], [0], [0], [1], [0, 0, 1, 1], [], []>} : vector<8x16xf32>, vector<16x64xf32>, vector<8x64xf32> -> vector<8x64xf32>
    %535 = arith.addf %532, %534 : vector<8x64xf32>
    %536 = vector.extract_strided_slice %535 {offsets = [0, 0], sizes = [8, 16], strides = [1, 1]} : vector<8x64xf32> to vector<8x16xf32>
    %537 = arith.negf %536 : vector<8x16xf32>
    %538 = math.exp %537 : vector<8x16xf32>
    %cst_159 = arith.constant 1.000000e+00 : f32
    %539 = vector.broadcast %cst_159 : f32 to vector<8x16xf32>
    %540 = arith.addf %539, %538 : vector<8x16xf32>
    %541 = arith.divf %539, %540 : vector<8x16xf32>
    %542 = vector.extract_strided_slice %535 {offsets = [0, 16], sizes = [8, 16], strides = [1, 1]} : vector<8x64xf32> to vector<8x16xf32>
    %543 = arith.negf %542 : vector<8x16xf32>
    %544 = math.exp %543 : vector<8x16xf32>
    %cst_160 = arith.constant 1.000000e+00 : f32
    %545 = vector.broadcast %cst_160 : f32 to vector<8x16xf32>
    %546 = arith.addf %545, %544 : vector<8x16xf32>
    %547 = arith.divf %545, %546 : vector<8x16xf32>
    %548 = vector.extract_strided_slice %535 {offsets = [0, 32], sizes = [8, 16], strides = [1, 1]} : vector<8x64xf32> to vector<8x16xf32>
    %549 = math.tanh %548 : vector<8x16xf32>
    %550 = vector.extract_strided_slice %535 {offsets = [0, 48], sizes = [8, 16], strides = [1, 1]} : vector<8x64xf32> to vector<8x16xf32>
    %551 = arith.negf %550 : vector<8x16xf32>
    %552 = math.exp %551 : vector<8x16xf32>
    %cst_161 = arith.constant 1.000000e+00 : f32
    %553 = vector.broadcast %cst_161 : f32 to vector<8x16xf32>
    %554 = arith.addf %553, %552 : vector<8x16xf32>
    %555 = arith.divf %553, %554 : vector<8x16xf32>
    %556 = arith.mulf %547, %523 : vector<8x16xf32>
    %557 = arith.mulf %541, %549 : vector<8x16xf32>
    %558 = arith.addf %556, %557 : vector<8x16xf32>
    %559 = math.tanh %558 : vector<8x16xf32>
    %560 = arith.mulf %555, %559 : vector<8x16xf32>
    %561 = arith.index_cast %c15_i32 : i32 to index
    %c0_162 = arith.constant 0 : index
    %c0_163 = arith.constant 0 : index
    %562 = vector.load %arg5[%561, %c0_162, %c0_163] : memref<16x8x16xf32, #tpu.memory_space<vmem>>, vector<1x8x16xf32>
    %563 = vector.shape_cast %562 : vector<1x8x16xf32> to vector<8x16xf32>
    %564 = vector.shape_cast %560 : vector<8x16xf32> to vector<1x8x16xf32>
    tpu.vector_store %arg5[%561, %c0_162, %c0_163], %564 {strides = array<i32>} : memref<16x8x16xf32, #tpu.memory_space<vmem>>, vector<1x8x16xf32>,
    %c16_i32 = arith.constant 16 : i32
    %c0_164 = arith.constant 0 : index
    %c0_165 = arith.constant 0 : index
    %565 = vector.load %arg6[%c0_164, %c0_165] : memref<8x16xf32, #tpu.memory_space<vmem>>, vector<8x16xf32>
    tpu.vector_store %arg6[%c0_164, %c0_165], %560 {strides = array<i32>} : memref<8x16xf32, #tpu.memory_space<vmem>>, vector<8x16xf32>,
    %c0_166 = arith.constant 0 : index
    %c0_167 = arith.constant 0 : index
    %566 = vector.load %arg7[%c0_166, %c0_167] : memref<8x16xf32, #tpu.memory_space<vmem>>, vector<8x16xf32>
    tpu.vector_store %arg7[%c0_166, %c0_167], %558 {strides = array<i32>} : memref<8x16xf32, #tpu.memory_space<vmem>>, vector<8x16xf32>,
    return
  }
  func.func @transform_0(%arg0: i32) -> (i32, i32, i32) {
    %c0_i32 = arith.constant 0 : i32
    %c0_i32_0 = arith.constant 0 : i32
    %c0_i32_1 = arith.constant 0 : i32
    return %arg0, %c0_i32, %c0_i32_0 : i32, i32, i32
  }
  func.func @transform_1(%arg0: i32) -> (i32, i32) {
    %c0_i32 = arith.constant 0 : i32
    %c0_i32_0 = arith.constant 0 : i32
    %c0_i32_1 = arith.constant 0 : i32
    return %c0_i32, %c0_i32_0 : i32, i32
  }
  func.func @transform_2(%arg0: i32) -> (i32, i32) {
    %c0_i32 = arith.constant 0 : i32
    %c0_i32_0 = arith.constant 0 : i32
    %c0_i32_1 = arith.constant 0 : i32
    return %c0_i32, %c0_i32_0 : i32, i32
  }
  func.func @transform_3(%arg0: i32) -> (i32, i32) {
    %c0_i32 = arith.constant 0 : i32
    %c0_i32_0 = arith.constant 0 : i32
    %c0_i32_1 = arith.constant 0 : i32
    return %c0_i32, %c0_i32_0 : i32, i32
  }
  func.func @transform_4(%arg0: i32) -> (i32, i32, i32) {
    %c0_i32 = arith.constant 0 : i32
    %c0_i32_0 = arith.constant 0 : i32
    %c0_i32_1 = arith.constant 0 : i32
    return %arg0, %c0_i32, %c0_i32_0 : i32, i32, i32
  }
}

</mosaic_0001>

<bundles_post_ra>
// kernel: tpu_custom_call.1
= control target key start
LH: loop header
LB: loop body
LE: loop exit
PB: predicated region body
PF: predicated region fallthrough
CT: control target
= control target key end

     0   :  { %9 = vsyncpa [#allocation5], 0  ;;  %s1731_s0 = inlined_call_operand.hbm [shape: f32[16,8,64], index: 0, kind: input, shape index: {}]   ;;  %s1732_s1 = inlined_call_operand.hbm [shape: f32[8,16], index: 1, kind: input, shape index: {}]   ;;  %s1733_s2 = inlined_call_operand.hbm [shape: f32[8,16], index: 2, kind: input, shape index: {}]   ;;  %s1734_s3 = inlined_call_operand.hbm [shape: f32[16,64], index: 3, kind: input, shape index: {}]   ;;  %s1735_s4 = inlined_call_operand.hbm [shape: f32[16,8,16], index: 4, kind: output, shape index: {}]  }
   0x1   :  { %10 = vsyncpa [#allocation8], 0 }
   0x2   :  { %11 = vsyncpa [#allocation11], 0  ;;  %s31_s17 = sshll.u32 %s1732_s1, 4  ;;  %s32_s17 = int_to_ptr.hbm [resolvable:$true] %s31_s17 }
   0x3   :  { %12 = vsyncpa [#allocation6], 0  ;;  %s1539_s18 = smov [#allocation7]   ;;  %s17_s22 = sshll.u32 %s1731_s0, 4  ;;  %s18_s22 = int_to_ptr.hbm [resolvable:$true] %s17_s22 }
   0x4   :  { %s33_s19 = sshll.u32 %s1539_s18, 4  ;;  %s1540_s23 = smov [#allocation4]   ;;  %s34_s19 = int_to_ptr.vmem [resolvable:$true] %s33_s19 }
   0x5   :  { %36 = dma.hbm_to_vmem [thread:$0]  %s32_s17, 128, %s34_s19, [#allocation8]  }
   0x6   :  { %s19_s24 = sshll.u32 %s1540_s23, 4  ;;  %s1541_s25 = smov 128   ;;  %s20_s24 = int_to_ptr.vmem [resolvable:$true] %s19_s24 }
   0x7   :  { %s1542_s26 = smov 8   ;;  %s42_s28 = sshll.u32 %s1733_s2, 4  ;;  %s43_s28 = int_to_ptr.hbm [resolvable:$true] %s42_s28 }
   0x8   :  { %25 = dma.hbm_to_vmem [thread:$0]  %s18_s22, 2048, %s20_s24, [#allocation5], %s1541_s25, %s1541_s25, %s1542_s26  }
   0x9   :  { %s1543_s29 = smov [#allocation9]   ;;  %s52_s6 = sshll.u32 %s1734_s3, 4  ;;  %s53_s6 = int_to_ptr.hbm [resolvable:$true] %s52_s6 }
   0xa   :  { %s44_s30 = sshll.u32 %s1543_s29, 4  ;;  %s1544_s7 = smov [#allocation10]   ;;  %s45_s30 = int_to_ptr.vmem [resolvable:$true] %s44_s30 }
   0xb   :  { %47 = dma.hbm_to_vmem [thread:$0]  %s43_s28, 128, %s45_s30, [#allocation8]  }
   0xc   :  { %s54_s8 = sshll.u32 %s1544_s7, 4  ;;  %s55_s8 = int_to_ptr.vmem [resolvable:$true] %s54_s8 }
   0xd   :  { %60 = dma.hbm_to_vmem [thread:$0]  %s53_s6, 256, %s55_s8, [#allocation11], %s1541_s25, %s1541_s25, %s1542_s26  }
   0xe   :  { %1531 = dma.done.wait [#allocation5], 2048  }
   0xf   :  { %1532 = vsyncadd [#allocation5], 4294965248 }
  0x10   :  { %1533 = dma.done.wait [#allocation8], 256  }
  0x11   :  { %1534 = vsyncadd [#allocation8], 4294967040 }
  0x12   :  { %1535 = dma.done.wait [#allocation11], 256  }
  0x13   :  { %1536 = vsyncadd [#allocation11], 4294967040  ;;  %vm82_vm0 = vcmask 130048   ;;  %v1594_v0 = vld [vmem:[#allocation10 + $0x8] sm:$0xff]  ;;  %v1596_v1 = vld [vmem:[#allocation10] sm:$0xff]  ;;  %s1545_s2 = smov 96  }
  0x14   :  { %v81_v2 = vld [vmem:[#allocation7] sm:$0xff]  ;;  %109 = vmatpush.msra.mxu0 %v1594_v0  ;;  %182 = vmatpush.msra.mxu1 %v1594_v0  ;;  %v84_v4 = vld [vmem:[#allocation9] sm:$0xff]  ;;  %s1546_s3 = smov 16   ;;  %s1547_s9 = smov 32   ;;  %v233_v59 = vld [vmem:[#allocation4 + $0x10] sm:$0xff] }
  0x15   :  { %83 = vst.msk [vmem:[#allocation2] sm:$0xff] %vm82_vm0, %v81_v2  ;;  %252 = vmatpush.msra.mxu2 %v1594_v0  ;;  %322 = vmatpush.msra.mxu3 %v1594_v0  ;;  %v88_v5 = vld [vmem:[#allocation4] sm:$0xff]  ;;  %s1548_s10 = smov 80   ;;  %v163_v33 = vld [vmem:[#allocation4 + $0x8] sm:$0xff]  ;;  %s1549_s11 = smov 112  }
  0x16   :  { %110 = vmatpush.msra.mxu0 %v1596_v1  ;;  %183 = vmatpush.msra.mxu1 %v1596_v1  ;;  %85 = vst.msk [vmem:[#allocation3] sm:$0xff] %vm82_vm0, %v84_v4  ;;  %s1550_s12 = smov [#allocation12]   ;;  %s1224_s16 = sshll.u32 %s1735_s4, 4  ;;  %s1225_s16 = int_to_ptr.hbm [resolvable:$true] %s1224_s16 }
  0x17   :  { %253 = vmatpush.msra.mxu2 %v1596_v1  ;;  %323 = vmatpush.msra.mxu3 %v1596_v1  ;;  %s1222_s13 = sshll.u32 %s1550_s12, 4  ;;  %s1223_s13 = int_to_ptr.vmem [resolvable:$true] %s1222_s13 }
  0x18   :  { %392 = vmatpush.msrb.mxu0 %v1594_v0  ;;  %462 = vmatpush.msrb.mxu1 %v1594_v0 }
  0x19   :  { %532 = vmatpush.msrb.mxu2 %v1594_v0  ;;  %602 = vmatpush.msrb.mxu3 %v1594_v0 }
  0x1a   :  { %393 = vmatpush.msrb.mxu0 %v1596_v1  ;;  %463 = vmatpush.msrb.mxu1 %v1596_v1 }
  0x1b   :  { %533 = vmatpush.msrb.mxu2 %v1596_v1  ;;  %603 = vmatpush.msrb.mxu3 %v1596_v1 }
  0x1c   :  { %v86_v3 = vld [vmem:[#allocation2] sm:$0xff] }
  0x1d   :  { %1239 = vmatmul.msk.f32.vlgmr.msra.gmra.mxu0 %vm82_vm0, %v86_v3  ;;  %v87_v9 = vld [vmem:[#allocation3] sm:$0xff] }
  0x1e   :  { %672 = vmatpush.msra.mxu0 %v1594_v0 }
  0x20   :  { %673 = vmatpush.msra.mxu0 %v1596_v1 }
  0x9a   :  { %v112_v6 = vpop.f32.mrf.mxu0 }
  0x9b   :  { %v115_v7 = vadd.f32 %v112_v6, %v88_v5 }
  0x9d   :  { %1283 = vtanh.f32 %v115_v7  ;;  %v1240_v10 = vmul.f32 -1.442695, %v115_v7 }
  0x9f   :  { %1285 = vpow2.f32 %v1240_v10 }
  0xa3   :  { %v1284_v8 = vpop.eup %1283 }
  0xa4   :  { %142 = vrot.lane.b32.xlu0 %v1284_v8, %s1545_s2 }
  0xa5   :  { %v1286_v11 = vpop.eup %1285 }
  0xa6   :  { %v119_v12 = vadd.f32 1.0, %v1286_v11 }
  0xa8   :  { %1287 = vrcp.f32 %v119_v12  ;;  %v131_v18 = vand.u32 2147483648, %v119_v12  ;;  %vm125_vm2 = vweird.f32 %v119_v12  ;;  %v129_v19 = vand.u32 2147483647, %v119_v12 }
  0xaa   :  { %v132_v21 = vor.u32 1.1754944e-38, %v131_v18  ;;  %vm130_vm4 = vcmp.eq.f32.partialorder %v129_v19, 8.507059e+37 }
  0xac   :  { %137 = vrot.lane.b32.xlu0 %v87_v9, %s1546_s3 }
  0xae   :  { %v1288_v13 = vpop.eup %1287 }
  0xaf   :  { %v121_v14 = vmul.f32 %v1288_v13, %v119_v12  ;;  %vm126_vm1 = vweird.f32 %v1288_v13 }
  0xb0   :  { %vm127_vm3 = vmor %vm125_vm2, %vm126_vm1 }
  0xb1   :  { %v122_v15 = vsub.f32 1.0, %v121_v14 }
  0xb3   :  { %v123_v16 = vmul.f32 %v1288_v13, %v122_v15 }
  0xb5   :  { %v124_v17 = vadd.f32 %v1288_v13, %v123_v16 }
  0xb7   :  { %v128_v20 = vsel %vm127_vm3, %v1288_v13, %v124_v17 }
  0xb8   :  { %v133_v23 = vsel %vm130_vm4, %v132_v21, %v128_v20 }
 0x116   :  { %v143_v22 = vpop.permute.xlu0 %142 }
 0x117   :  { %v145_v24 = vmul.f32 %v143_v22, %v133_v23 }
 0x119   :  { %147 = vrot.lane.b32.xlu1 %v145_v24, %s1546_s3 }
 0x11e   :  { %v138_v25 = vpop.permute.xlu0 %137 }
 0x11f   :  { %v140_v26 = vmul.f32 %v138_v25, %v133_v23 }
 0x18b   :  { %v148_v27 = vpop.permute.xlu1 %147 }
 0x18c   :  { %v150_v28 = vadd.f32 %v148_v27, %v140_v26 }
 0x18e   :  { %1289 = vtanh.f32 %v150_v28 }
 0x194   :  { %v1290_v29 = vpop.eup %1289 }
 0x195   :  { %153 = vrot.lane.b32.xlu1 %v1290_v29, %s1547_s9 }
 0x207   :  { %v154_v30 = vpop.permute.xlu1 %153 }
 0x208   :  { %v156_v31 = vmul.f32 %v154_v30, %v133_v23  ;;  %v303_v23 = vld [vmem:[#allocation4 + $0x18] sm:$0xff] }
 0x20a   :  { %158 = vrot.lane.b32.xlu2 %v156_v31, %s1548_s10 }
 0x264   :  { %v159_v32 = vpop.permute.xlu2 %158 }
 0x265   :  { %161 = vst.msk [vmem:[#allocation12] sm:$0xff] %vm82_vm0, %v159_v32  ;;  %1241 = vmatmul.msk.f32.vlgmr.msra.gmra.mxu1 %vm82_vm0, %v159_v32 }
 0x266   :  { %742 = vmatpush.msra.mxu1 %v1594_v0 }
 0x268   :  { %743 = vmatpush.msra.mxu1 %v1596_v1 }
 0x2e2   :  { %v185_v34 = vpop.f32.mrf.mxu1 }
 0x2e3   :  { %v188_v35 = vadd.f32 %v185_v34, %v163_v33 }
 0x2e5   :  { %1291 = vtanh.f32 %v188_v35  ;;  %v1242_v37 = vmul.f32 -1.442695, %v188_v35 }
 0x2e7   :  { %1293 = vpow2.f32 %v1242_v37 }
 0x2eb   :  { %v1292_v36 = vpop.eup %1291 }
 0x2ec   :  { %211 = vrot.lane.b32.xlu2 %v1292_v36, %s1545_s2 }
 0x2ed   :  { %v1294_v38 = vpop.eup %1293 }
 0x2ee   :  { %v192_v39 = vadd.f32 1.0, %v1294_v38 }
 0x2f0   :  { %1295 = vrcp.f32 %v192_v39  ;;  %v204_v45 = vand.u32 2147483648, %v192_v39  ;;  %vm198_vm6 = vweird.f32 %v192_v39  ;;  %v202_v46 = vand.u32 2147483647, %v192_v39 }
 0x2f2   :  { %v205_v48 = vor.u32 1.1754944e-38, %v204_v45  ;;  %vm203_vm8 = vcmp.eq.f32.partialorder %v202_v46, 8.507059e+37 }
 0x2f6   :  { %v1296_v40 = vpop.eup %1295 }
 0x2f7   :  { %v194_v41 = vmul.f32 %v1296_v40, %v192_v39  ;;  %vm199_vm5 = vweird.f32 %v1296_v40 }
 0x2f8   :  { %vm200_vm7 = vmor %vm198_vm6, %vm199_vm5 }
 0x2f9   :  { %v195_v42 = vsub.f32 1.0, %v194_v41 }
 0x2fb   :  { %v196_v43 = vmul.f32 %v1296_v40, %v195_v42 }
 0x2fd   :  { %v197_v44 = vadd.f32 %v1296_v40, %v196_v43 }
 0x2ff   :  { %v201_v47 = vsel %vm200_vm7, %v1296_v40, %v197_v44 }
 0x300   :  { %v206_v50 = vsel %vm203_vm8, %v205_v48, %v201_v47 }
 0x301   :  { %v209_v52 = vmul.f32 %v206_v50, %v150_v28 }
 0x346   :  { %v212_v49 = vpop.permute.xlu2 %211 }
 0x347   :  { %v214_v51 = vmul.f32 %v212_v49, %v206_v50  ;;  %v373_v49 = vld [vmem:[#allocation4 + $0x20] sm:$0xff] }
 0x349   :  { %216 = vrot.lane.b32.xlu0 %v214_v51, %s1546_s3 }
 0x3bb   :  { %v217_v53 = vpop.permute.xlu0 %216 }
 0x3bc   :  { %v219_v54 = vadd.f32 %v217_v53, %v209_v52 }
 0x3be   :  { %1297 = vtanh.f32 %v219_v54 }
 0x3c4   :  { %v1298_v55 = vpop.eup %1297 }
 0x3c5   :  { %222 = vrot.lane.b32.xlu1 %v1298_v55, %s1547_s9 }
 0x437   :  { %v223_v56 = vpop.permute.xlu1 %222 }
 0x438   :  { %v225_v57 = vmul.f32 %v223_v56, %v206_v50 }
 0x43a   :  { %227 = vrot.lane.b32.xlu2 %v225_v57, %s1548_s10 }
 0x494   :  { %v228_v58 = vpop.permute.xlu2 %227 }
 0x495   :  { %231 = vst.msk [vmem:[#allocation12 + $0x8] sm:$0xff] %vm82_vm0, %v228_v58  ;;  %1243 = vmatmul.msk.f32.vlgmr.msra.gmra.mxu2 %vm82_vm0, %v228_v58 }
 0x496   :  { %812 = vmatpush.msra.mxu2 %v1594_v0 }
 0x498   :  { %813 = vmatpush.msra.mxu2 %v1596_v1 }
 0x518   :  { %v255_v60 = vpop.f32.mrf.mxu2 }
 0x519   :  { %v258_v61 = vadd.f32 %v255_v60, %v233_v59 }
 0x51b   :  { %1299 = vtanh.f32 %v258_v61  ;;  %v1244_v63 = vmul.f32 -1.442695, %v258_v61 }
 0x51d   :  { %1301 = vpow2.f32 %v1244_v63 }
 0x521   :  { %v1300_v62 = vpop.eup %1299 }
 0x522   :  { %281 = vrot.lane.b32.xlu0 %v1300_v62, %s1545_s2 }
 0x523   :  { %v1302_v2 = vpop.eup %1301 }
 0x524   :  { %v262_v3 = vadd.f32 1.0, %v1302_v2 }
 0x526   :  { %1303 = vrcp.f32 %v262_v3  ;;  %v274_v9 = vand.u32 2147483648, %v262_v3  ;;  %vm268_vm10 = vweird.f32 %v262_v3  ;;  %v272_v10 = vand.u32 2147483647, %v262_v3 }
 0x528   :  { %v275_v12 = vor.u32 1.1754944e-38, %v274_v9  ;;  %vm273_vm12 = vcmp.eq.f32.partialorder %v272_v10, 8.507059e+37 }
 0x52c   :  { %v1304_v4 = vpop.eup %1303 }
 0x52d   :  { %v264_v5 = vmul.f32 %v1304_v4, %v262_v3  ;;  %vm269_vm9 = vweird.f32 %v1304_v4 }
 0x52e   :  { %vm270_vm11 = vmor %vm268_vm10, %vm269_vm9 }
 0x52f   :  { %v265_v6 = vsub.f32 1.0, %v264_v5 }
 0x531   :  { %v266_v7 = vmul.f32 %v1304_v4, %v265_v6 }
 0x533   :  { %v267_v8 = vadd.f32 %v1304_v4, %v266_v7 }
 0x535   :  { %v271_v11 = vsel %vm270_vm11, %v1304_v4, %v267_v8 }
 0x536   :  { %v276_v14 = vsel %vm273_vm12, %v275_v12, %v271_v11  ;;  %v443_v11 = vld [vmem:[#allocation4 + $0x28] sm:$0xff] }
 0x537   :  { %v279_v16 = vmul.f32 %v276_v14, %v219_v54 }
 0x594   :  { %v282_v13 = vpop.permute.xlu0 %281 }
 0x595   :  { %v284_v15 = vmul.f32 %v282_v13, %v276_v14 }
 0x597   :  { %286 = vrot.lane.b32.xlu1 %v284_v15, %s1546_s3 }
 0x609   :  { %v287_v17 = vpop.permute.xlu1 %286 }
 0x60a   :  { %v289_v18 = vadd.f32 %v287_v17, %v279_v16 }
 0x60c   :  { %1305 = vtanh.f32 %v289_v18 }
 0x612   :  { %v1306_v19 = vpop.eup %1305 }
 0x613   :  { %292 = vrot.lane.b32.xlu2 %v1306_v19, %s1547_s9 }
 0x66d   :  { %v293_v20 = vpop.permute.xlu2 %292 }
 0x66e   :  { %v295_v21 = vmul.f32 %v293_v20, %v276_v14 }
 0x670   :  { %297 = vrot.lane.b32.xlu0 %v295_v21, %s1548_s10 }
 0x6e2   :  { %v298_v22 = vpop.permute.xlu0 %297 }
 0x6e3   :  { %301 = vst.msk [vmem:[#allocation12 + $0x10] sm:$0xff] %vm82_vm0, %v298_v22  ;;  %1245 = vmatmul.msk.f32.vlgmr.msra.gmra.mxu3 %vm82_vm0, %v298_v22 }
 0x6e4   :  { %882 = vmatpush.msra.mxu3 %v1594_v0 }
 0x6e6   :  { %883 = vmatpush.msra.mxu3 %v1596_v1 }
 0x766   :  { %v325_v24 = vpop.f32.mrf.mxu3 }
 0x767   :  { %v328_v25 = vadd.f32 %v325_v24, %v303_v23 }
 0x769   :  { %1307 = vtanh.f32 %v328_v25  ;;  %v1246_v27 = vmul.f32 -1.442695, %v328_v25 }
 0x76b   :  { %1309 = vpow2.f32 %v1246_v27 }
 0x76f   :  { %v1308_v26 = vpop.eup %1307 }
 0x770   :  { %351 = vrot.lane.b32.xlu1 %v1308_v26, %s1545_s2 }
 0x771   :  { %v1310_v28 = vpop.eup %1309 }
 0x772   :  { %v332_v29 = vadd.f32 1.0, %v1310_v28 }
 0x774   :  { %1311 = vrcp.f32 %v332_v29  ;;  %v344_v35 = vand.u32 2147483648, %v332_v29  ;;  %vm338_vm14 = vweird.f32 %v332_v29  ;;  %v342_v36 = vand.u32 2147483647, %v332_v29 }
 0x776   :  { %v345_v38 = vor.u32 1.1754944e-38, %v344_v35  ;;  %vm343_vm1 = vcmp.eq.f32.partialorder %v342_v36, 8.507059e+37 }
 0x77a   :  { %v1312_v30 = vpop.eup %1311 }
 0x77b   :  { %v334_v31 = vmul.f32 %v1312_v30, %v332_v29  ;;  %vm339_vm13 = vweird.f32 %v1312_v30 }
 0x77c   :  { %vm340_vm15 = vmor %vm338_vm14, %vm339_vm13 }
 0x77d   :  { %v335_v32 = vsub.f32 1.0, %v334_v31 }
 0x77f   :  { %v336_v33 = vmul.f32 %v1312_v30, %v335_v32 }
 0x781   :  { %v337_v34 = vadd.f32 %v1312_v30, %v336_v33 }
 0x783   :  { %v341_v37 = vsel %vm340_vm15, %v1312_v30, %v337_v34 }
 0x784   :  { %v346_v40 = vsel %vm343_vm1, %v345_v38, %v341_v37  ;;  %v513_v37 = vld [vmem:[#allocation4 + $0x30] sm:$0xff] }
 0x785   :  { %v349_v42 = vmul.f32 %v346_v40, %v289_v18 }
 0x7e2   :  { %v352_v39 = vpop.permute.xlu1 %351 }
 0x7e3   :  { %v354_v41 = vmul.f32 %v352_v39, %v346_v40 }
 0x7e5   :  { %356 = vrot.lane.b32.xlu2 %v354_v41, %s1546_s3 }
 0x83f   :  { %v357_v43 = vpop.permute.xlu2 %356 }
 0x840   :  { %v359_v44 = vadd.f32 %v357_v43, %v349_v42 }
 0x842   :  { %1313 = vtanh.f32 %v359_v44 }
 0x848   :  { %v1314_v45 = vpop.eup %1313 }
 0x849   :  { %362 = vrot.lane.b32.xlu0 %v1314_v45, %s1547_s9 }
 0x8bb   :  { %v363_v46 = vpop.permute.xlu0 %362 }
 0x8bc   :  { %v365_v47 = vmul.f32 %v363_v46, %v346_v40 }
 0x8be   :  { %367 = vrot.lane.b32.xlu1 %v365_v47, %s1548_s10 }
 0x930   :  { %v368_v48 = vpop.permute.xlu1 %367 }
 0x931   :  { %371 = vst.msk [vmem:[#allocation12 + $0x18] sm:$0xff] %vm82_vm0, %v368_v48  ;;  %1247 = vmatmul.msk.f32.vlgmr.msrb.gmra.mxu0 %vm82_vm0, %v368_v48 }
 0x932   :  { %952 = vmatpush.msrb.mxu0 %v1594_v0 }
 0x934   :  { %953 = vmatpush.msrb.mxu0 %v1596_v1 }
 0x9ae   :  { %v395_v50 = vpop.f32.mrf.mxu0 }
 0x9af   :  { %v398_v51 = vadd.f32 %v395_v50, %v373_v49 }
 0x9b1   :  { %1315 = vtanh.f32 %v398_v51  ;;  %v1248_v53 = vmul.f32 -1.442695, %v398_v51 }
 0x9b3   :  { %1317 = vpow2.f32 %v1248_v53 }
 0x9b7   :  { %v1316_v52 = vpop.eup %1315 }
 0x9b8   :  { %421 = vrot.lane.b32.xlu2 %v1316_v52, %s1545_s2 }
 0x9b9   :  { %v1318_v54 = vpop.eup %1317 }
 0x9ba   :  { %v402_v55 = vadd.f32 1.0, %v1318_v54 }
 0x9bc   :  { %1319 = vrcp.f32 %v402_v55  ;;  %v414_v0 = vand.u32 2147483648, %v402_v55  ;;  %vm408_vm3 = vweird.f32 %v402_v55  ;;  %v412_v1 = vand.u32 2147483647, %v402_v55 }
 0x9be   :  { %v415_v62 = vor.u32 1.1754944e-38, %v414_v0  ;;  %vm413_vm5 = vcmp.eq.f32.partialorder %v412_v1, 8.507059e+37 }
 0x9c2   :  { %v1320_v56 = vpop.eup %1319 }
 0x9c3   :  { %v404_v57 = vmul.f32 %v1320_v56, %v402_v55  ;;  %vm409_vm2 = vweird.f32 %v1320_v56 }
 0x9c4   :  { %vm410_vm4 = vmor %vm408_vm3, %vm409_vm2 }
 0x9c5   :  { %v405_v58 = vsub.f32 1.0, %v404_v57 }
 0x9c7   :  { %v406_v59 = vmul.f32 %v1320_v56, %v405_v58 }
 0x9c9   :  { %v407_v60 = vadd.f32 %v1320_v56, %v406_v59 }
 0x9cb   :  { %v411_v61 = vsel %vm410_vm4, %v1320_v56, %v407_v60 }
 0x9cc   :  { %v416_v2 = vsel %vm413_vm5, %v415_v62, %v411_v61  ;;  %v583_v61 = vld [vmem:[#allocation4 + $0x38] sm:$0xff] }
 0x9cd   :  { %v419_v4 = vmul.f32 %v416_v2, %v359_v44 }
 0xa12   :  { %v422_v63 = vpop.permute.xlu2 %421 }
 0xa13   :  { %v424_v3 = vmul.f32 %v422_v63, %v416_v2 }
 0xa15   :  { %426 = vrot.lane.b32.xlu0 %v424_v3, %s1546_s3 }
 0xa87   :  { %v427_v5 = vpop.permute.xlu0 %426 }
 0xa88   :  { %v429_v6 = vadd.f32 %v427_v5, %v419_v4 }
 0xa8a   :  { %1321 = vtanh.f32 %v429_v6 }
 0xa90   :  { %v1322_v7 = vpop.eup %1321 }
 0xa91   :  { %432 = vrot.lane.b32.xlu1 %v1322_v7, %s1547_s9 }
 0xb03   :  { %v433_v8 = vpop.permute.xlu1 %432 }
 0xb04   :  { %v435_v9 = vmul.f32 %v433_v8, %v416_v2 }
 0xb06   :  { %437 = vrot.lane.b32.xlu2 %v435_v9, %s1548_s10 }
 0xb60   :  { %v438_v10 = vpop.permute.xlu2 %437 }
 0xb61   :  { %441 = vst.msk [vmem:[#allocation12 + $0x20] sm:$0xff] %vm82_vm0, %v438_v10  ;;  %1249 = vmatmul.msk.f32.vlgmr.msrb.gmra.mxu1 %vm82_vm0, %v438_v10 }
 0xbde   :  { %v465_v12 = vpop.f32.mrf.mxu1 }
 0xbdf   :  { %v468_v13 = vadd.f32 %v465_v12, %v443_v11 }
 0xbe1   :  { %1323 = vtanh.f32 %v468_v13  ;;  %v1250_v15 = vmul.f32 -1.442695, %v468_v13 }
 0xbe3   :  { %1325 = vpow2.f32 %v1250_v15 }
 0xbe7   :  { %v1324_v14 = vpop.eup %1323 }
 0xbe8   :  { %491 = vrot.lane.b32.xlu0 %v1324_v14, %s1545_s2 }
 0xbe9   :  { %v1326_v16 = vpop.eup %1325 }
 0xbea   :  { %v472_v17 = vadd.f32 1.0, %v1326_v16 }
 0xbec   :  { %1327 = vrcp.f32 %v472_v17  ;;  %v484_v23 = vand.u32 2147483648, %v472_v17  ;;  %vm478_vm7 = vweird.f32 %v472_v17  ;;  %v482_v24 = vand.u32 2147483647, %v472_v17 }
 0xbee   :  { %v485_v26 = vor.u32 1.1754944e-38, %v484_v23  ;;  %vm483_vm9 = vcmp.eq.f32.partialorder %v482_v24, 8.507059e+37 }
 0xbf2   :  { %v1328_v18 = vpop.eup %1327 }
 0xbf3   :  { %v474_v19 = vmul.f32 %v1328_v18, %v472_v17  ;;  %vm479_vm6 = vweird.f32 %v1328_v18 }
 0xbf4   :  { %vm480_vm8 = vmor %vm478_vm7, %vm479_vm6 }
 0xbf5   :  { %v475_v20 = vsub.f32 1.0, %v474_v19 }
 0xbf7   :  { %v476_v21 = vmul.f32 %v1328_v18, %v475_v20 }
 0xbf9   :  { %v477_v22 = vadd.f32 %v1328_v18, %v476_v21 }
 0xbfb   :  { %v481_v25 = vsel %vm480_vm8, %v1328_v18, %v477_v22 }
 0xbfc   :  { %v486_v28 = vsel %vm483_vm9, %v485_v26, %v481_v25  ;;  %v653_v25 = vld [vmem:[#allocation4 + $0x40] sm:$0xff] }
 0xbfd   :  { %v489_v30 = vmul.f32 %v486_v28, %v429_v6 }
 0xc5a   :  { %v492_v27 = vpop.permute.xlu0 %491 }
 0xc5b   :  { %v494_v29 = vmul.f32 %v492_v27, %v486_v28 }
 0xc5d   :  { %496 = vrot.lane.b32.xlu1 %v494_v29, %s1546_s3 }
 0xccf   :  { %v497_v31 = vpop.permute.xlu1 %496 }
 0xcd0   :  { %v499_v32 = vadd.f32 %v497_v31, %v489_v30 }
 0xcd2   :  { %1329 = vtanh.f32 %v499_v32 }
 0xcd8   :  { %v1330_v33 = vpop.eup %1329 }
 0xcd9   :  { %502 = vrot.lane.b32.xlu2 %v1330_v33, %s1547_s9 }
 0xd33   :  { %v503_v34 = vpop.permute.xlu2 %502 }
 0xd34   :  { %v505_v35 = vmul.f32 %v503_v34, %v486_v28 }
 0xd36   :  { %507 = vrot.lane.b32.xlu0 %v505_v35, %s1548_s10 }
 0xda8   :  { %v508_v36 = vpop.permute.xlu0 %507 }
 0xda9   :  { %511 = vst.msk [vmem:[#allocation12 + $0x28] sm:$0xff] %vm82_vm0, %v508_v36  ;;  %1251 = vmatmul.msk.f32.vlgmr.msrb.gmra.mxu2 %vm82_vm0, %v508_v36 }
 0xe2c   :  { %v535_v38 = vpop.f32.mrf.mxu2 }
 0xe2d   :  { %v538_v39 = vadd.f32 %v535_v38, %v513_v37 }
 0xe2f   :  { %1331 = vtanh.f32 %v538_v39  ;;  %v1252_v41 = vmul.f32 -1.442695, %v538_v39 }
 0xe31   :  { %1333 = vpow2.f32 %v1252_v41 }
 0xe35   :  { %v1332_v40 = vpop.eup %1331 }
 0xe36   :  { %561 = vrot.lane.b32.xlu1 %v1332_v40, %s1545_s2 }
 0xe37   :  { %v1334_v42 = vpop.eup %1333 }
 0xe38   :  { %v542_v43 = vadd.f32 1.0, %v1334_v42 }
 0xe3a   :  { %1335 = vrcp.f32 %v542_v43  ;;  %v554_v49 = vand.u32 2147483648, %v542_v43  ;;  %vm548_vm11 = vweird.f32 %v542_v43  ;;  %v552_v50 = vand.u32 2147483647, %v542_v43 }
 0xe3c   :  { %v555_v52 = vor.u32 1.1754944e-38, %v554_v49  ;;  %vm553_vm13 = vcmp.eq.f32.partialorder %v552_v50, 8.507059e+37 }
 0xe40   :  { %v1336_v44 = vpop.eup %1335 }
 0xe41   :  { %v544_v45 = vmul.f32 %v1336_v44, %v542_v43  ;;  %vm549_vm10 = vweird.f32 %v1336_v44 }
 0xe42   :  { %vm550_vm12 = vmor %vm548_vm11, %vm549_vm10 }
 0xe43   :  { %v545_v46 = vsub.f32 1.0, %v544_v45 }
 0xe45   :  { %v546_v47 = vmul.f32 %v1336_v44, %v545_v46 }
 0xe47   :  { %v547_v48 = vadd.f32 %v1336_v44, %v546_v47 }
 0xe49   :  { %v551_v51 = vsel %vm550_vm12, %v1336_v44, %v547_v48 }
 0xe4a   :  { %v556_v54 = vsel %vm553_vm13, %v555_v52, %v551_v51  ;;  %v723_v51 = vld [vmem:[#allocation4 + $0x48] sm:$0xff] }
 0xe4b   :  { %v559_v56 = vmul.f32 %v556_v54, %v499_v32 }
 0xea8   :  { %v562_v53 = vpop.permute.xlu1 %561 }
 0xea9   :  { %v564_v55 = vmul.f32 %v562_v53, %v556_v54 }
 0xeab   :  { %566 = vrot.lane.b32.xlu2 %v564_v55, %s1546_s3 }
 0xf05   :  { %v567_v57 = vpop.permute.xlu2 %566 }
 0xf06   :  { %v569_v58 = vadd.f32 %v567_v57, %v559_v56 }
 0xf08   :  { %1337 = vtanh.f32 %v569_v58 }
 0xf0e   :  { %v1338_v59 = vpop.eup %1337 }
 0xf0f   :  { %572 = vrot.lane.b32.xlu0 %v1338_v59, %s1547_s9 }
 0xf81   :  { %v573_v60 = vpop.permute.xlu0 %572 }
 0xf82   :  { %v575_v0 = vmul.f32 %v573_v60, %v556_v54 }
 0xf84   :  { %577 = vrot.lane.b32.xlu1 %v575_v0, %s1548_s10 }
 0xff6   :  { %v578_v1 = vpop.permute.xlu1 %577 }
 0xff7   :  { %581 = vst.msk [vmem:[#allocation12 + $0x30] sm:$0xff] %vm82_vm0, %v578_v1  ;;  %1253 = vmatmul.msk.f32.vlgmr.msrb.gmra.mxu3 %vm82_vm0, %v578_v1 }
0x107a   :  { %v605_v62 = vpop.f32.mrf.mxu3 }
0x107b   :  { %v608_v63 = vadd.f32 %v605_v62, %v583_v61 }
0x107d   :  { %1339 = vtanh.f32 %v608_v63  ;;  %v1254_v3 = vmul.f32 -1.442695, %v608_v63 }
0x107f   :  { %1341 = vpow2.f32 %v1254_v3 }
0x1083   :  { %v1340_v2 = vpop.eup %1339 }
0x1084   :  { %631 = vrot.lane.b32.xlu2 %v1340_v2, %s1545_s2 }
0x1085   :  { %v1342_v4 = vpop.eup %1341 }
0x1086   :  { %v612_v5 = vadd.f32 1.0, %v1342_v4 }
0x1088   :  { %1343 = vrcp.f32 %v612_v5  ;;  %v624_v11 = vand.u32 2147483648, %v612_v5  ;;  %vm618_vm15 = vweird.f32 %v612_v5  ;;  %v622_v12 = vand.u32 2147483647, %v612_v5 }
0x108a   :  { %v625_v14 = vor.u32 1.1754944e-38, %v624_v11  ;;  %vm623_vm2 = vcmp.eq.f32.partialorder %v622_v12, 8.507059e+37 }
0x108e   :  { %v1344_v6 = vpop.eup %1343 }
0x108f   :  { %v614_v7 = vmul.f32 %v1344_v6, %v612_v5  ;;  %vm619_vm14 = vweird.f32 %v1344_v6 }
0x1090   :  { %vm620_vm1 = vmor %vm618_vm15, %vm619_vm14 }
0x1091   :  { %v615_v8 = vsub.f32 1.0, %v614_v7 }
0x1093   :  { %v616_v9 = vmul.f32 %v1344_v6, %v615_v8 }
0x1095   :  { %v617_v10 = vadd.f32 %v1344_v6, %v616_v9 }
0x1097   :  { %v621_v13 = vsel %vm620_vm1, %v1344_v6, %v617_v10 }
0x1098   :  { %v626_v16 = vsel %vm623_vm2, %v625_v14, %v621_v13  ;;  %v793_v13 = vld [vmem:[#allocation4 + $0x50] sm:$0xff] }
0x1099   :  { %v629_v18 = vmul.f32 %v626_v16, %v569_v58 }
0x10de   :  { %v632_v15 = vpop.permute.xlu2 %631 }
0x10df   :  { %v634_v17 = vmul.f32 %v632_v15, %v626_v16 }
0x10e1   :  { %636 = vrot.lane.b32.xlu0 %v634_v17, %s1546_s3 }
0x1153   :  { %v637_v19 = vpop.permute.xlu0 %636 }
0x1154   :  { %v639_v20 = vadd.f32 %v637_v19, %v629_v18 }
0x1156   :  { %1345 = vtanh.f32 %v639_v20 }
0x115c   :  { %v1346_v21 = vpop.eup %1345 }
0x115d   :  { %642 = vrot.lane.b32.xlu1 %v1346_v21, %s1547_s9 }
0x11cf   :  { %v643_v22 = vpop.permute.xlu1 %642 }
0x11d0   :  { %v645_v23 = vmul.f32 %v643_v22, %v626_v16 }
0x11d2   :  { %647 = vrot.lane.b32.xlu2 %v645_v23, %s1548_s10 }
0x122c   :  { %v648_v24 = vpop.permute.xlu2 %647 }
0x122d   :  { %651 = vst.msk [vmem:[#allocation12 + $0x38] sm:$0xff] %vm82_vm0, %v648_v24  ;;  %1255 = vmatmul.msk.f32.vlgmr.msra.gmra.mxu0 %vm82_vm0, %v648_v24 }
0x12aa   :  { %v675_v26 = vpop.f32.mrf.mxu0 }
0x12ab   :  { %v678_v27 = vadd.f32 %v675_v26, %v653_v25 }
0x12ad   :  { %1347 = vtanh.f32 %v678_v27  ;;  %v1256_v29 = vmul.f32 -1.442695, %v678_v27 }
0x12af   :  { %1349 = vpow2.f32 %v1256_v29 }
0x12b3   :  { %v1348_v28 = vpop.eup %1347 }
0x12b4   :  { %701 = vrot.lane.b32.xlu0 %v1348_v28, %s1545_s2 }
0x12b5   :  { %v1350_v30 = vpop.eup %1349 }
0x12b6   :  { %v682_v31 = vadd.f32 1.0, %v1350_v30 }
0x12b8   :  { %1351 = vrcp.f32 %v682_v31  ;;  %v694_v37 = vand.u32 2147483648, %v682_v31  ;;  %vm688_vm4 = vweird.f32 %v682_v31  ;;  %v692_v38 = vand.u32 2147483647, %v682_v31 }
0x12ba   :  { %v695_v40 = vor.u32 1.1754944e-38, %v694_v37  ;;  %vm693_vm6 = vcmp.eq.f32.partialorder %v692_v38, 8.507059e+37 }
0x12be   :  { %v1352_v32 = vpop.eup %1351 }
0x12bf   :  { %v684_v33 = vmul.f32 %v1352_v32, %v682_v31  ;;  %vm689_vm3 = vweird.f32 %v1352_v32 }
0x12c0   :  { %vm690_vm5 = vmor %vm688_vm4, %vm689_vm3 }
0x12c1   :  { %v685_v34 = vsub.f32 1.0, %v684_v33 }
0x12c3   :  { %v686_v35 = vmul.f32 %v1352_v32, %v685_v34 }
0x12c5   :  { %v687_v36 = vadd.f32 %v1352_v32, %v686_v35 }
0x12c7   :  { %v691_v39 = vsel %vm690_vm5, %v1352_v32, %v687_v36 }
0x12c8   :  { %v696_v42 = vsel %vm693_vm6, %v695_v40, %v691_v39  ;;  %v863_v39 = vld [vmem:[#allocation4 + $0x58] sm:$0xff] }
0x12c9   :  { %v699_v44 = vmul.f32 %v696_v42, %v639_v20 }
0x1326   :  { %v702_v41 = vpop.permute.xlu0 %701 }
0x1327   :  { %v704_v43 = vmul.f32 %v702_v41, %v696_v42 }
0x1329   :  { %706 = vrot.lane.b32.xlu1 %v704_v43, %s1546_s3 }
0x139b   :  { %v707_v45 = vpop.permute.xlu1 %706 }
0x139c   :  { %v709_v46 = vadd.f32 %v707_v45, %v699_v44 }
0x139e   :  { %1353 = vtanh.f32 %v709_v46 }
0x13a4   :  { %v1354_v47 = vpop.eup %1353 }
0x13a5   :  { %712 = vrot.lane.b32.xlu2 %v1354_v47, %s1547_s9 }
0x13ff   :  { %v713_v48 = vpop.permute.xlu2 %712 }
0x1400   :  { %v715_v49 = vmul.f32 %v713_v48, %v696_v42 }
0x1402   :  { %717 = vrot.lane.b32.xlu0 %v715_v49, %s1548_s10 }
0x1474   :  { %v718_v50 = vpop.permute.xlu0 %717 }
0x1475   :  { %721 = vst.msk [vmem:[#allocation12 + $0x40] sm:$0xff] %vm82_vm0, %v718_v50  ;;  %1257 = vmatmul.msk.f32.vlgmr.msra.gmra.mxu1 %vm82_vm0, %v718_v50 }
0x14f2   :  { %v745_v52 = vpop.f32.mrf.mxu1 }
0x14f3   :  { %v748_v53 = vadd.f32 %v745_v52, %v723_v51 }
0x14f5   :  { %1355 = vtanh.f32 %v748_v53  ;;  %v1258_v55 = vmul.f32 -1.442695, %v748_v53 }
0x14f7   :  { %1357 = vpow2.f32 %v1258_v55 }
0x14fb   :  { %v1356_v54 = vpop.eup %1355 }
0x14fc   :  { %771 = vrot.lane.b32.xlu1 %v1356_v54, %s1545_s2 }
0x14fd   :  { %v1358_v56 = vpop.eup %1357 }
0x14fe   :  { %v752_v57 = vadd.f32 1.0, %v1358_v56 }
0x1500   :  { %1359 = vrcp.f32 %v752_v57  ;;  %v764_v61 = vand.u32 2147483648, %v752_v57  ;;  %vm758_vm8 = vweird.f32 %v752_v57  ;;  %v762_v62 = vand.u32 2147483647, %v752_v57 }
0x1502   :  { %v765_v2 = vor.u32 1.1754944e-38, %v764_v61  ;;  %vm763_vm10 = vcmp.eq.f32.partialorder %v762_v62, 8.507059e+37 }
0x1506   :  { %v1360_v58 = vpop.eup %1359 }
0x1507   :  { %v754_v59 = vmul.f32 %v1360_v58, %v752_v57  ;;  %vm759_vm7 = vweird.f32 %v1360_v58 }
0x1508   :  { %vm760_vm9 = vmor %vm758_vm8, %vm759_vm7 }
0x1509   :  { %v755_v60 = vsub.f32 1.0, %v754_v59 }
0x150b   :  { %v756_v0 = vmul.f32 %v1360_v58, %v755_v60 }
0x150d   :  { %v757_v1 = vadd.f32 %v1360_v58, %v756_v0 }
0x150f   :  { %v761_v63 = vsel %vm760_vm9, %v1360_v58, %v757_v1 }
0x1510   :  { %v766_v4 = vsel %vm763_vm10, %v765_v2, %v761_v63  ;;  %v933_v63 = vld [vmem:[#allocation4 + $0x60] sm:$0xff] }
0x1511   :  { %v769_v6 = vmul.f32 %v766_v4, %v709_v46 }
0x156e   :  { %v772_v3 = vpop.permute.xlu1 %771 }
0x156f   :  { %v774_v5 = vmul.f32 %v772_v3, %v766_v4 }
0x1571   :  { %776 = vrot.lane.b32.xlu2 %v774_v5, %s1546_s3 }
0x15cb   :  { %v777_v7 = vpop.permute.xlu2 %776 }
0x15cc   :  { %v779_v8 = vadd.f32 %v777_v7, %v769_v6 }
0x15ce   :  { %1361 = vtanh.f32 %v779_v8 }
0x15d4   :  { %v1362_v9 = vpop.eup %1361 }
0x15d5   :  { %782 = vrot.lane.b32.xlu0 %v1362_v9, %s1547_s9 }
0x1647   :  { %v783_v10 = vpop.permute.xlu0 %782 }
0x1648   :  { %v785_v11 = vmul.f32 %v783_v10, %v766_v4 }
0x164a   :  { %787 = vrot.lane.b32.xlu1 %v785_v11, %s1548_s10 }
0x16bc   :  { %v788_v12 = vpop.permute.xlu1 %787 }
0x16bd   :  { %791 = vst.msk [vmem:[#allocation12 + $0x48] sm:$0xff] %vm82_vm0, %v788_v12  ;;  %1259 = vmatmul.msk.f32.vlgmr.msra.gmra.mxu2 %vm82_vm0, %v788_v12 }
0x1740   :  { %v815_v14 = vpop.f32.mrf.mxu2 }
0x1741   :  { %v818_v15 = vadd.f32 %v815_v14, %v793_v13 }
0x1743   :  { %1363 = vtanh.f32 %v818_v15  ;;  %v1260_v17 = vmul.f32 -1.442695, %v818_v15 }
0x1745   :  { %1365 = vpow2.f32 %v1260_v17 }
0x1749   :  { %v1364_v16 = vpop.eup %1363 }
0x174a   :  { %841 = vrot.lane.b32.xlu2 %v1364_v16, %s1545_s2 }
0x174b   :  { %v1366_v18 = vpop.eup %1365 }
0x174c   :  { %v822_v19 = vadd.f32 1.0, %v1366_v18 }
0x174e   :  { %1367 = vrcp.f32 %v822_v19  ;;  %v834_v25 = vand.u32 2147483648, %v822_v19  ;;  %vm828_vm12 = vweird.f32 %v822_v19  ;;  %v832_v26 = vand.u32 2147483647, %v822_v19 }
0x1750   :  { %v835_v28 = vor.u32 1.1754944e-38, %v834_v25  ;;  %vm833_vm14 = vcmp.eq.f32.partialorder %v832_v26, 8.507059e+37  ;;  %v1004_v25 = vld [vmem:[#allocation10] sm:$0xff] }
0x1754   :  { %v1368_v20 = vpop.eup %1367 }
0x1755   :  { %v824_v21 = vmul.f32 %v1368_v20, %v822_v19  ;;  %vm829_vm11 = vweird.f32 %v1368_v20 }
0x1756   :  { %vm830_vm13 = vmor %vm828_vm12, %vm829_vm11 }
0x1757   :  { %v825_v22 = vsub.f32 1.0, %v824_v21 }
0x1759   :  { %v826_v23 = vmul.f32 %v1368_v20, %v825_v22 }
0x175b   :  { %v827_v24 = vadd.f32 %v1368_v20, %v826_v23 }
0x175d   :  { %v831_v27 = vsel %vm830_vm13, %v1368_v20, %v827_v24  ;;  %v1005_v24 = vld [vmem:[#allocation10 + $0x8] sm:$0xff] }
0x175e   :  { %v836_v30 = vsel %vm833_vm14, %v835_v28, %v831_v27  ;;  %1022 = vmatpush.msrb.mxu1 %v1005_v24  ;;  %1092 = vmatpush.msrb.mxu2 %v1005_v24 }
0x175f   :  { %v839_v32 = vmul.f32 %v836_v30, %v779_v8  ;;  %1162 = vmatpush.msrb.mxu3 %v1005_v24 }
0x1760   :  { %1023 = vmatpush.msrb.mxu1 %v1004_v25  ;;  %1093 = vmatpush.msrb.mxu2 %v1004_v25 }
0x1761   :  { %1163 = vmatpush.msrb.mxu3 %v1004_v25 }
0x17a4   :  { %v842_v29 = vpop.permute.xlu2 %841 }
0x17a5   :  { %v844_v31 = vmul.f32 %v842_v29, %v836_v30  ;;  %v1003_v29 = vld [vmem:[#allocation4 + $0x68] sm:$0xff] }
0x17a7   :  { %846 = vrot.lane.b32.xlu0 %v844_v31, %s1546_s3 }
0x1819   :  { %v847_v33 = vpop.permute.xlu0 %846 }
0x181a   :  { %v849_v34 = vadd.f32 %v847_v33, %v839_v32 }
0x181c   :  { %1369 = vtanh.f32 %v849_v34 }
0x1822   :  { %v1370_v35 = vpop.eup %1369 }
0x1823   :  { %852 = vrot.lane.b32.xlu1 %v1370_v35, %s1547_s9 }
0x1895   :  { %v853_v36 = vpop.permute.xlu1 %852 }
0x1896   :  { %v855_v37 = vmul.f32 %v853_v36, %v836_v30 }
0x1898   :  { %857 = vrot.lane.b32.xlu2 %v855_v37, %s1548_s10 }
0x18f2   :  { %v858_v38 = vpop.permute.xlu2 %857 }
0x18f3   :  { %861 = vst.msk [vmem:[#allocation12 + $0x50] sm:$0xff] %vm82_vm0, %v858_v38  ;;  %1261 = vmatmul.msk.f32.vlgmr.msra.gmra.mxu3 %vm82_vm0, %v858_v38 }
0x1976   :  { %v885_v40 = vpop.f32.mrf.mxu3 }
0x1977   :  { %v888_v41 = vadd.f32 %v885_v40, %v863_v39 }
0x1979   :  { %1371 = vtanh.f32 %v888_v41  ;;  %v1262_v43 = vmul.f32 -1.442695, %v888_v41 }
0x197b   :  { %1373 = vpow2.f32 %v1262_v43 }
0x197f   :  { %v1372_v42 = vpop.eup %1371 }
0x1980   :  { %911 = vrot.lane.b32.xlu0 %v1372_v42, %s1545_s2 }
0x1981   :  { %v1374_v44 = vpop.eup %1373 }
0x1982   :  { %v892_v45 = vadd.f32 1.0, %v1374_v44 }
0x1984   :  { %1375 = vrcp.f32 %v892_v45  ;;  %v904_v51 = vand.u32 2147483648, %v892_v45  ;;  %vm898_vm1 = vweird.f32 %v892_v45  ;;  %v902_v52 = vand.u32 2147483647, %v892_v45 }
0x1986   :  { %v905_v54 = vor.u32 1.1754944e-38, %v904_v51  ;;  %vm903_vm3 = vcmp.eq.f32.partialorder %v902_v52, 8.507059e+37 }
0x198a   :  { %v1376_v46 = vpop.eup %1375 }
0x198b   :  { %v894_v47 = vmul.f32 %v1376_v46, %v892_v45  ;;  %vm899_vm15 = vweird.f32 %v1376_v46 }
0x198c   :  { %vm900_vm2 = vmor %vm898_vm1, %vm899_vm15 }
0x198d   :  { %v895_v48 = vsub.f32 1.0, %v894_v47 }
0x198f   :  { %v896_v49 = vmul.f32 %v1376_v46, %v895_v48 }
0x1991   :  { %v897_v50 = vadd.f32 %v1376_v46, %v896_v49 }
0x1993   :  { %v901_v53 = vsel %vm900_vm2, %v1376_v46, %v897_v50 }
0x1994   :  { %v906_v56 = vsel %vm903_vm3, %v905_v54, %v901_v53 }
0x1995   :  { %v909_v58 = vmul.f32 %v906_v56, %v849_v34 }
0x19f2   :  { %v912_v55 = vpop.permute.xlu0 %911 }
0x19f3   :  { %v914_v57 = vmul.f32 %v912_v55, %v906_v56  ;;  %v1073_v55 = vld [vmem:[#allocation4 + $0x70] sm:$0xff] }
0x19f5   :  { %916 = vrot.lane.b32.xlu1 %v914_v57, %s1546_s3 }
0x1a67   :  { %v917_v59 = vpop.permute.xlu1 %916 }
0x1a68   :  { %v919_v60 = vadd.f32 %v917_v59, %v909_v58 }
0x1a6a   :  { %1377 = vtanh.f32 %v919_v60 }
0x1a70   :  { %v1378_v0 = vpop.eup %1377 }
0x1a71   :  { %922 = vrot.lane.b32.xlu2 %v1378_v0, %s1547_s9 }
0x1acb   :  { %v923_v1 = vpop.permute.xlu2 %922 }
0x1acc   :  { %v925_v61 = vmul.f32 %v923_v1, %v906_v56 }
0x1ace   :  { %927 = vrot.lane.b32.xlu0 %v925_v61, %s1548_s10 }
0x1b40   :  { %v928_v62 = vpop.permute.xlu0 %927 }
0x1b41   :  { %931 = vst.msk [vmem:[#allocation12 + $0x58] sm:$0xff] %vm82_vm0, %v928_v62  ;;  %1263 = vmatmul.msk.f32.vlgmr.msrb.gmra.mxu0 %vm82_vm0, %v928_v62 }
0x1bbe   :  { %v955_v2 = vpop.f32.mrf.mxu0 }
0x1bbf   :  { %v958_v3 = vadd.f32 %v955_v2, %v933_v63 }
0x1bc1   :  { %1379 = vtanh.f32 %v958_v3  ;;  %v1264_v5 = vmul.f32 -1.442695, %v958_v3 }
0x1bc3   :  { %1381 = vpow2.f32 %v1264_v5 }
0x1bc7   :  { %v1380_v4 = vpop.eup %1379 }
0x1bc8   :  { %981 = vrot.lane.b32.xlu1 %v1380_v4, %s1545_s2 }
0x1bc9   :  { %v1382_v6 = vpop.eup %1381 }
0x1bca   :  { %v962_v7 = vadd.f32 1.0, %v1382_v6 }
0x1bcc   :  { %1383 = vrcp.f32 %v962_v7  ;;  %v974_v13 = vand.u32 2147483648, %v962_v7  ;;  %vm968_vm5 = vweird.f32 %v962_v7  ;;  %v972_v14 = vand.u32 2147483647, %v962_v7 }
0x1bce   :  { %v975_v16 = vor.u32 1.1754944e-38, %v974_v13  ;;  %vm973_vm7 = vcmp.eq.f32.partialorder %v972_v14, 8.507059e+37 }
0x1bd2   :  { %v1384_v8 = vpop.eup %1383 }
0x1bd3   :  { %v964_v9 = vmul.f32 %v1384_v8, %v962_v7  ;;  %vm969_vm4 = vweird.f32 %v1384_v8 }
0x1bd4   :  { %vm970_vm6 = vmor %vm968_vm5, %vm969_vm4 }
0x1bd5   :  { %v965_v10 = vsub.f32 1.0, %v964_v9 }
0x1bd7   :  { %v966_v11 = vmul.f32 %v1384_v8, %v965_v10 }
0x1bd9   :  { %v967_v12 = vadd.f32 %v1384_v8, %v966_v11 }
0x1bdb   :  { %v971_v15 = vsel %vm970_vm6, %v1384_v8, %v967_v12 }
0x1bdc   :  { %v976_v18 = vsel %vm973_vm7, %v975_v16, %v971_v15 }
0x1bdd   :  { %v979_v20 = vmul.f32 %v976_v18, %v919_v60 }
0x1c3a   :  { %v982_v17 = vpop.permute.xlu1 %981 }
0x1c3b   :  { %v984_v19 = vmul.f32 %v982_v17, %v976_v18  ;;  %v1143_v17 = vld [vmem:[#allocation4 + $0x78] sm:$0xff] }
0x1c3d   :  { %986 = vrot.lane.b32.xlu2 %v984_v19, %s1546_s3 }
0x1c97   :  { %v987_v21 = vpop.permute.xlu2 %986 }
0x1c98   :  { %v989_v22 = vadd.f32 %v987_v21, %v979_v20 }
0x1c9a   :  { %1385 = vtanh.f32 %v989_v22 }
0x1ca0   :  { %v1386_v23 = vpop.eup %1385 }
0x1ca1   :  { %992 = vrot.lane.b32.xlu0 %v1386_v23, %s1547_s9 }
0x1d13   :  { %v993_v26 = vpop.permute.xlu0 %992 }
0x1d14   :  { %v995_v27 = vmul.f32 %v993_v26, %v976_v18 }
0x1d16   :  { %997 = vrot.lane.b32.xlu1 %v995_v27, %s1548_s10 }
0x1d88   :  { %v998_v28 = vpop.permute.xlu1 %997 }
0x1d89   :  { %1001 = vst.msk [vmem:[#allocation12 + $0x60] sm:$0xff] %vm82_vm0, %v998_v28  ;;  %1265 = vmatmul.msk.f32.vlgmr.msrb.gmra.mxu1 %vm82_vm0, %v998_v28 }
0x1e06   :  { %v1025_v30 = vpop.f32.mrf.mxu1 }
0x1e07   :  { %v1028_v31 = vadd.f32 %v1025_v30, %v1003_v29 }
0x1e09   :  { %1387 = vtanh.f32 %v1028_v31  ;;  %v1266_v33 = vmul.f32 -1.442695, %v1028_v31 }
0x1e0b   :  { %1389 = vpow2.f32 %v1266_v33 }
0x1e0f   :  { %v1388_v32 = vpop.eup %1387 }
0x1e10   :  { %1051 = vrot.lane.b32.xlu2 %v1388_v32, %s1545_s2 }
0x1e11   :  { %v1390_v34 = vpop.eup %1389 }
0x1e12   :  { %v1032_v35 = vadd.f32 1.0, %v1390_v34 }
0x1e14   :  { %1391 = vrcp.f32 %v1032_v35  ;;  %v1044_v41 = vand.u32 2147483648, %v1032_v35  ;;  %vm1038_vm9 = vweird.f32 %v1032_v35  ;;  %v1042_v42 = vand.u32 2147483647, %v1032_v35 }
0x1e16   :  { %v1045_v44 = vor.u32 1.1754944e-38, %v1044_v41  ;;  %vm1043_vm11 = vcmp.eq.f32.partialorder %v1042_v42, 8.507059e+37 }
0x1e1a   :  { %v1392_v36 = vpop.eup %1391 }
0x1e1b   :  { %v1034_v37 = vmul.f32 %v1392_v36, %v1032_v35  ;;  %vm1039_vm8 = vweird.f32 %v1392_v36 }
0x1e1c   :  { %vm1040_vm10 = vmor %vm1038_vm9, %vm1039_vm8 }
0x1e1d   :  { %v1035_v38 = vsub.f32 1.0, %v1034_v37 }
0x1e1f   :  { %v1036_v39 = vmul.f32 %v1392_v36, %v1035_v38 }
0x1e21   :  { %v1037_v40 = vadd.f32 %v1392_v36, %v1036_v39 }
0x1e23   :  { %v1041_v43 = vsel %vm1040_vm10, %v1392_v36, %v1037_v40 }
0x1e24   :  { %v1046_v46 = vsel %vm1043_vm11, %v1045_v44, %v1041_v43 }
0x1e25   :  { %v1049_v48 = vmul.f32 %v1046_v46, %v989_v22 }
0x1e6a   :  { %v1052_v45 = vpop.permute.xlu2 %1051 }
0x1e6b   :  { %v1054_v47 = vmul.f32 %v1052_v45, %v1046_v46 }
0x1e6d   :  { %1056 = vrot.lane.b32.xlu0 %v1054_v47, %s1546_s3 }
0x1edf   :  { %v1057_v49 = vpop.permute.xlu0 %1056 }
0x1ee0   :  { %v1059_v50 = vadd.f32 %v1057_v49, %v1049_v48 }
0x1ee2   :  { %1393 = vtanh.f32 %v1059_v50 }
0x1ee8   :  { %v1394_v51 = vpop.eup %1393 }
0x1ee9   :  { %1062 = vrot.lane.b32.xlu1 %v1394_v51, %s1547_s9 }
0x1f5b   :  { %v1063_v52 = vpop.permute.xlu1 %1062 }
0x1f5c   :  { %v1065_v53 = vmul.f32 %v1063_v52, %v1046_v46 }
0x1f5e   :  { %1067 = vrot.lane.b32.xlu2 %v1065_v53, %s1548_s10 }
0x1fb8   :  { %v1068_v54 = vpop.permute.xlu2 %1067 }
0x1fb9   :  { %1071 = vst.msk [vmem:[#allocation12 + $0x68] sm:$0xff] %vm82_vm0, %v1068_v54  ;;  %1267 = vmatmul.msk.f32.vlgmr.msrb.gmra.mxu2 %vm82_vm0, %v1068_v54 }
0x203c   :  { %v1095_v56 = vpop.f32.mrf.mxu2 }
0x203d   :  { %v1098_v57 = vadd.f32 %v1095_v56, %v1073_v55 }
0x203f   :  { %1395 = vtanh.f32 %v1098_v57  ;;  %v1268_v59 = vmul.f32 -1.442695, %v1098_v57 }
0x2041   :  { %1397 = vpow2.f32 %v1268_v59 }
0x2045   :  { %v1396_v58 = vpop.eup %1395 }
0x2046   :  { %1121 = vrot.lane.b32.xlu0 %v1396_v58, %s1545_s2 }
0x2047   :  { %v1398_v60 = vpop.eup %1397 }
0x2048   :  { %v1102_v0 = vadd.f32 1.0, %v1398_v60 }
0x204a   :  { %1399 = vrcp.f32 %v1102_v0  ;;  %v1114_v3 = vand.u32 2147483648, %v1102_v0  ;;  %vm1108_vm13 = vweird.f32 %v1102_v0  ;;  %v1112_v4 = vand.u32 2147483647, %v1102_v0 }
0x204c   :  { %v1115_v6 = vor.u32 1.1754944e-38, %v1114_v3  ;;  %vm1113_vm15 = vcmp.eq.f32.partialorder %v1112_v4, 8.507059e+37 }
0x2050   :  { %v1400_v1 = vpop.eup %1399 }
0x2051   :  { %v1104_v61 = vmul.f32 %v1400_v1, %v1102_v0  ;;  %vm1109_vm12 = vweird.f32 %v1400_v1 }
0x2052   :  { %vm1110_vm14 = vmor %vm1108_vm13, %vm1109_vm12 }
0x2053   :  { %v1105_v62 = vsub.f32 1.0, %v1104_v61 }
0x2055   :  { %v1106_v63 = vmul.f32 %v1400_v1, %v1105_v62 }
0x2057   :  { %v1107_v2 = vadd.f32 %v1400_v1, %v1106_v63 }
0x2059   :  { %v1111_v5 = vsel %vm1110_vm14, %v1400_v1, %v1107_v2 }
0x205a   :  { %v1116_v8 = vsel %vm1113_vm15, %v1115_v6, %v1111_v5 }
0x205b   :  { %v1119_v10 = vmul.f32 %v1116_v8, %v1059_v50 }
0x20b8   :  { %v1122_v7 = vpop.permute.xlu0 %1121 }
0x20b9   :  { %v1124_v9 = vmul.f32 %v1122_v7, %v1116_v8 }
0x20bb   :  { %1126 = vrot.lane.b32.xlu1 %v1124_v9, %s1546_s3 }
0x212d   :  { %v1127_v11 = vpop.permute.xlu1 %1126 }
0x212e   :  { %v1129_v12 = vadd.f32 %v1127_v11, %v1119_v10 }
0x2130   :  { %1401 = vtanh.f32 %v1129_v12 }
0x2136   :  { %v1402_v13 = vpop.eup %1401 }
0x2137   :  { %1132 = vrot.lane.b32.xlu2 %v1402_v13, %s1547_s9 }
0x2191   :  { %v1133_v14 = vpop.permute.xlu2 %1132 }
0x2192   :  { %v1135_v15 = vmul.f32 %v1133_v14, %v1116_v8 }
0x2194   :  { %1137 = vrot.lane.b32.xlu0 %v1135_v15, %s1548_s10 }
0x2206   :  { %v1138_v16 = vpop.permute.xlu0 %1137 }
0x2207   :  { %1141 = vst.msk [vmem:[#allocation12 + $0x70] sm:$0xff] %vm82_vm0, %v1138_v16  ;;  %1269 = vmatmul.msk.f32.vlgmr.msrb.gmra.mxu3 %vm82_vm0, %v1138_v16 }
0x228a   :  { %v1165_v18 = vpop.f32.mrf.mxu3 }
0x228b   :  { %v1168_v19 = vadd.f32 %v1165_v18, %v1143_v17 }
0x228d   :  { %1403 = vtanh.f32 %v1168_v19  ;;  %v1270_v21 = vmul.f32 -1.442695, %v1168_v19 }
0x228f   :  { %1405 = vpow2.f32 %v1270_v21 }
0x2293   :  { %v1404_v20 = vpop.eup %1403 }
0x2294   :  { %1191 = vrot.lane.b32.xlu1 %v1404_v20, %s1545_s2 }
0x2295   :  { %v1406_v22 = vpop.eup %1405 }
0x2296   :  { %v1172_v23 = vadd.f32 1.0, %v1406_v22 }
0x2298   :  { %1407 = vrcp.f32 %v1172_v23  ;;  %v1184_v29 = vand.u32 2147483648, %v1172_v23  ;;  %vm1178_vm2 = vweird.f32 %v1172_v23  ;;  %v1182_v30 = vand.u32 2147483647, %v1172_v23 }
0x229a   :  { %v1185_v32 = vor.u32 1.1754944e-38, %v1184_v29  ;;  %vm1183_vm4 = vcmp.eq.f32.partialorder %v1182_v30, 8.507059e+37 }
0x229e   :  { %v1408_v24 = vpop.eup %1407 }
0x229f   :  { %v1174_v25 = vmul.f32 %v1408_v24, %v1172_v23  ;;  %vm1179_vm1 = vweird.f32 %v1408_v24 }
0x22a0   :  { %vm1180_vm3 = vmor %vm1178_vm2, %vm1179_vm1 }
0x22a1   :  { %v1175_v26 = vsub.f32 1.0, %v1174_v25 }
0x22a3   :  { %v1176_v27 = vmul.f32 %v1408_v24, %v1175_v26 }
0x22a5   :  { %v1177_v28 = vadd.f32 %v1408_v24, %v1176_v27 }
0x22a7   :  { %v1181_v31 = vsel %vm1180_vm3, %v1408_v24, %v1177_v28 }
0x22a8   :  { %v1186_v34 = vsel %vm1183_vm4, %v1185_v32, %v1181_v31 }
0x22a9   :  { %v1189_v36 = vmul.f32 %v1186_v34, %v1129_v12 }
0x2306   :  { %v1192_v33 = vpop.permute.xlu1 %1191 }
0x2307   :  { %v1194_v35 = vmul.f32 %v1192_v33, %v1186_v34 }
0x2309   :  { %1196 = vrot.lane.b32.xlu2 %v1194_v35, %s1546_s3 }
0x2363   :  { %v1197_v37 = vpop.permute.xlu2 %1196 }
0x2364   :  { %v1199_v38 = vadd.f32 %v1197_v37, %v1189_v36 }
0x2366   :  { %1409 = vtanh.f32 %v1199_v38  ;;  %1214 = vrot.lane.b32.xlu2 %v1199_v38, %s1549_s11 }
0x236c   :  { %v1410_v39 = vpop.eup %1409 }
0x236d   :  { %1202 = vrot.lane.b32.xlu0 %v1410_v39, %s1547_s9 }
0x23c0   :  { %v1215_v40 = vpop.permute.xlu2 %1214 }
0x23c1   :  { %1217 = vst.msk [vmem:[#allocation3] sm:$0xff] %vm82_vm0, %v1215_v40 }
0x23df   :  { %v1203_v41 = vpop.permute.xlu0 %1202 }
0x23e0   :  { %v1205_v42 = vmul.f32 %v1203_v41, %v1186_v34 }
0x23e2   :  { %1207 = vrot.lane.b32.xlu1 %v1205_v42, %s1548_s10 }
0x2454   :  { %v1208_v43 = vpop.permute.xlu1 %1207 }
0x2455   :  { %1211 = vst.msk [vmem:[#allocation12 + $0x78] sm:$0xff] %vm82_vm0, %v1208_v43 }
0x2456   :  { %1212 = vst.msk [vmem:[#allocation2] sm:$0xff] %vm82_vm0, %v1208_v43  ;;  %1230 = dma.vmem_to_hbm [thread:$0]  %s1223_s13, 2048, %s1225_s16, [#allocation6], %s1541_s25, %s1541_s25, %s1542_s26  }
0x2457   :  { %1537 = dma.done.wait [#allocation6], 2048  }
0x2458   :  { %1538 = vsyncadd [#allocation6], 4294965248 }
0x2459   :  { %1235 = vsyncpa [#allocation5], 1 }
0x245a   :  { %1236 = vsyncpa [#allocation8], 1 }
0x245b   :  { %1237 = vsyncpa [#allocation11], 1 }
0x245c   :  { %1238 = vsyncpa [#allocation6], 1 }

</bundles_post_ra>
